<compile_context>
chip_gen: v7x
topology: tpu7x:2x2x1
jax: 0.10.0
libtpu: 0.0.40
codegen_flags: <defaults>
</compile_context>

<pallas_src>
import jax
import jax.numpy as jnp
from jax.experimental import pallas as pl
from jax.experimental.pallas import tpu as pltpu


def _pcn_encoder_kernel(x_ref, w1, b1, w2cat, b2, w3b, b3f, w4, b4, out_ref):
    Gb, N, _ = x_ref.shape
    M = Gb * N

    # (Gb, N, 3) -> (Gb*N, 3) row block (points on sublanes, xyz on lanes).
    # TODO(synk): could feed native (G, 3, N) and relayout in-kernel (XLU has
    # slack) to skip the wrapper transpose's extra HBM round trip of the input.
    x = x_ref[...].reshape(M, 3)

    # conv1 (3 -> 128) as VPU broadcast FMAs + ReLU.
    h1 = (x[:, 0:1] * w1[0:1, :]
          + x[:, 1:2] * w1[1:2, :]
          + x[:, 2:3] * w1[2:3, :]
          + b1[...])
    h1 = jnp.maximum(h1, 0.0)                                   # (M, 128) f32
    h1b = h1.astype(jnp.bfloat16)

    # conv2 (128->256) and fused conv3a (128->512) share LHS h1: one K=128
    # bf16 MXU matmul (f32 accumulation) yields [f | pf].
    fp = jnp.dot(h1b, w2cat[...], preferred_element_type=jnp.float32)  # (M, 768)
    f = fp[:, :256] + b2[...]        # conv2 output; only needed for the max
    pf = fp[:, 256:]                 # == h1 @ (w2 @ w3[:256]); b2@w3[:256] is in b3f

    # Per-group global max over points -> global feature g.
    g = jnp.max(f.reshape(Gb, N, -1), axis=1)                   # (Gb, 256)

    # conv3 second half on the (tiny) per-group global feature.
    pg = jnp.dot(g.astype(jnp.bfloat16), w3b[...],
                 preferred_element_type=jnp.float32)            # (Gb, 512)

    # relu(cat([f, g]) @ w3 + b3) == relu(pf + pg + (b3 + b2 @ w3[:256])).
    h2 = jnp.maximum(pf.reshape(Gb, N, -1) + pg[:, None, :] + b3f[...], 0.0)

    # conv4 (512 -> F), bf16 MXU matmul with f32 accumulation.
    f2 = jnp.dot(h2.reshape(M, -1).astype(jnp.bfloat16), w4[...],
                 preferred_element_type=jnp.float32) + b4[...]  # (M, F)

    # Per-group global max over points -> (Gb, F).
    out_ref[...] = jnp.max(f2.reshape(Gb, N, -1), axis=1).reshape(1, Gb, -1)


def _generation_config():
    """Per-TPU-generation tiling config (rows per grid step, min steps, VMEM cap)."""
    kind = ""
    try:
        kind = jax.devices()[0].device_kind.lower()
    except Exception:
        pass
    if "7" in kind:
        # v7x: 2 TensorCores but only 64 MiB VMEM/TC -> keep >=4 grid steps so
        # each core double-buffers its input block; cap at ~2048 rows/step.
        return dict(target_rows=2048, min_blocks=4, vmem_limit=48 * 1024 * 1024)
    if "v5" in kind or "v6" in kind:
        # Single TensorCore, 128 MiB VMEM: extra grid steps are pure serial
        # overhead, so make the block as big as comfortably fits.
        return dict(target_rows=4096, min_blocks=1, vmem_limit=96 * 1024 * 1024)
    # Unknown TPU: conservative middle ground.
    return dict(target_rows=2048, min_blocks=1, vmem_limit=64 * 1024 * 1024)


def _pick_group_block(G, N, target_rows, min_blocks):
    """Groups per grid step: <= target_rows rows, >= min_blocks steps when possible."""
    by_rows = max(1, target_rows // N)
    by_steps = max(1, pl.cdiv(G, min_blocks))
    return min(by_rows, by_steps)


def feature_extractor(group_points, params):
    """group_points: (B, S, 3, N) float32 -> (B, S, F) float32."""
    B, S, C, N = group_points.shape
    assert C == 3
    F = params["w4"].shape[1]
    G = B * S
    cfg = _generation_config()

    # (B, S, 3, N) -> (G, N, 3): points on sublanes, xyz on lanes.
    x = jnp.transpose(group_points, (0, 1, 3, 2)).reshape(G, N, C)

    # Keep N a multiple of 8 so the in-kernel (M,C)<->(Gb,N,C) reshapes are
    # layout-preserving; duplicated points do not change the per-group max.
    if N % 8 != 0:
        pad_n = (-N) % 8
        x = jnp.concatenate([x, jnp.broadcast_to(x[:, :1, :], (G, pad_n, C))], axis=1)
        N += pad_n

    # Groups per grid step; pad G up so Gb never collapses to 1 for awkward B*S.
    Gb = _pick_group_block(G, N, cfg["target_rows"], cfg["min_blocks"])
    num_blocks = pl.cdiv(G, Gb)
    G_pad = num_blocks * Gb
    if G_pad != G:
        x = jnp.concatenate([x, jnp.zeros((G_pad - G, N, C), x.dtype)], axis=0)

    # Weight prep (all fusion algebra in f32, single bf16 cast for the MXU):
    #   f @ w3[:256] == h1 @ (w2 @ w3[:256]) + b2 @ w3[:256]
    w3a = params["w3"][:256]
    w23a = params["w2"] @ w3a                                           # (128, 512) f32
    w2cat = jnp.concatenate([params["w2"], w23a], axis=1).astype(jnp.bfloat16)  # (128, 768)
    b3f = params["b3"] + params["b2"] @ w3a                             # (1, 512) f32
    w3b = params["w3"][256:].astype(jnp.bfloat16)                       # (256, 512)
    w4 = params["w4"].astype(jnp.bfloat16)                              # (512, F)
    w1, b1, b2, b4 = params["w1"], params["b1"], params["b2"], params["b4"]

    def full(a):
        return pl.BlockSpec(a.shape, lambda i: (0,) * a.ndim)

    out = pl.pallas_call(
        _pcn_encoder_kernel,
        out_shape=jax.ShapeDtypeStruct((num_blocks, Gb, F), jnp.float32),
        grid=(num_blocks,),
        in_specs=[
            pl.BlockSpec((Gb, N, C), lambda i: (i, 0, 0)),
            full(w1), full(b1),
            full(w2cat), full(b2),
            full(w3b), full(b3f),
            full(w4), full(b4),
        ],
        # TODO(synk): F < 128 lowers to masked partial stores; a transposed
        # (F, Gb) store layout only pays off if G is very large in production.
        out_specs=pl.BlockSpec((1, Gb, F), lambda i: (i, 0, 0)),
        compiler_params=pltpu.CompilerParams(
            dimension_semantics=("parallel",),
            vmem_limit_bytes=cfg["vmem_limit"]),
    )(x, w1, b1, w2cat, b2, w3b, b3f, w4, b4)

    # (num_blocks, Gb, F) -> (B, S, F)  == torch cat(..., -1).transpose(2, 1)
    return out.reshape(G_pad, F)[:G].reshape(B, S, F)


def init_params(key, num_feats):
    """Deterministic synthetic weights. Conv1d(k=1) weights stored as (Cin, Cout)."""
    ks = jax.random.split(key, 8)
    dims = [(3, 128), (128, 256), (512, 512), (512, num_feats)]
    params = {}
    for i, (cin, cout) in enumerate(dims, start=1):
        params[f"w{i}"] = 0.1 * jax.random.normal(ks[2 * i - 2], (cin, cout), jnp.float32)
        params[f"b{i}"] = 0.1 * jax.random.normal(ks[2 * i - 1], (1, cout), jnp.float32)
    return params


def feature_extractor_ref(group_points, params):
    """Pure-JAX f32 reference of the original (unfused) math."""
    x = jnp.transpose(group_points, (0, 1, 3, 2))              # (B, S, N, 3)
    h = jnp.maximum(x @ params["w1"] + params["b1"], 0.0)
    f = h @ params["w2"] + params["b2"]                        # (B, S, N, 256)
    g = jnp.max(f, axis=2, keepdims=True)
    c = jnp.concatenate([f, jnp.broadcast_to(g, f.shape)], -1)
    h2 = jnp.maximum(c @ params["w3"] + params["b3"], 0.0)
    f2 = h2 @ params["w4"] + params["b4"]                      # (B, S, N, F)
    return jnp.max(f2, axis=2)                                 # (B, S, F)


if __name__ == "__main__":
    key = jax.random.PRNGKey(0)
    k_x, k_p = jax.random.split(key)

    B, S, N, num_feats = 2, 4, 16, 32      # batch, segments, points/segment, feature dim
    group_points = jax.random.normal(k_x, (B, S, 3, N), jnp.float32)
    params = init_params(k_p, num_feats)

    out = feature_extractor(group_points, params)
    out = jax.block_until_ready(out)

    ref = feature_extractor_ref(group_points, params)
    assert out.shape == (B, S, num_feats)
    # bf16 MXU matmuls (f32 accumulation) -> slightly looser tolerance than pure f32.
    assert jnp.allclose(out, ref, rtol=2e-2, atol=2e-2)

    print("KERNEL_OK")
</pallas_src>

<mosaic_0001>
module attributes {stable_mosaic.version = 11 : i64} {
  func.func @_pcn_encoder_kernel(%arg0: i32, %arg1: memref<8x16x3xf32, #tpu.memory_space<vmem>>, %arg2: memref<3x128xf32, #tpu.memory_space<vmem>>, %arg3: memref<1x128xf32, #tpu.memory_space<vmem>>, %arg4: memref<128x768xbf16, #tpu.memory_space<vmem>>, %arg5: memref<1x256xf32, #tpu.memory_space<vmem>>, %arg6: memref<256x512xbf16, #tpu.memory_space<vmem>>, %arg7: memref<1x512xf32, #tpu.memory_space<vmem>>, %arg8: memref<512x32xbf16, #tpu.memory_space<vmem>>, %arg9: memref<1x32xf32, #tpu.memory_space<vmem>>, %arg10: memref<1x8x32xf32, #tpu.memory_space<vmem>>) attributes {dimension_semantics = [#tpu.dimension_semantics<parallel>], iteration_bounds = array<i64: 1>, scalar_prefetch = 0 : i64, scratch_operands = 0 : i64, tpu.core_type = #tpu.core_type<tc>, window_params = [{transform_indices = @transform_0, window_bounds = array<i64: 8, 16, 3>}, {pipeline_mode = #tpu.pipeline_mode<synchronous>, transform_indices = @transform_1, window_bounds = array<i64: 3, 128>}, {pipeline_mode = #tpu.pipeline_mode<synchronous>, transform_indices = @transform_2, window_bounds = array<i64: 1, 128>}, {pipeline_mode = #tpu.pipeline_mode<synchronous>, transform_indices = @transform_3, window_bounds = array<i64: 128, 768>}, {pipeline_mode = #tpu.pipeline_mode<synchronous>, transform_indices = @transform_4, window_bounds = array<i64: 1, 256>}, {pipeline_mode = #tpu.pipeline_mode<synchronous>, transform_indices = @transform_5, window_bounds = array<i64: 256, 512>}, {pipeline_mode = #tpu.pipeline_mode<synchronous>, transform_indices = @transform_6, window_bounds = array<i64: 1, 512>}, {pipeline_mode = #tpu.pipeline_mode<synchronous>, transform_indices = @transform_7, window_bounds = array<i64: 512, 32>}, {pipeline_mode = #tpu.pipeline_mode<synchronous>, transform_indices = @transform_8, window_bounds = array<i64: 1, 32>}, {transform_indices = @transform_9, window_bounds = array<i64: 1, 8, 32>}]} {
    %c0 = arith.constant 0 : index
    %c0_0 = arith.constant 0 : index
    %c0_1 = arith.constant 0 : index
    %0 = vector.load %arg1[%c0, %c0_0, %c0_1] : memref<8x16x3xf32, #tpu.memory_space<vmem>>, vector<8x16x3xf32>
    %1 = vector.shape_cast %0 : vector<8x16x3xf32> to vector<128x3xf32>
    %2 = vector.extract_strided_slice %1 {offsets = [0, 0], sizes = [128, 1], strides = [1, 1]} : vector<128x3xf32> to vector<128x1xf32>
    %c0_2 = arith.constant 0 : index
    %c0_3 = arith.constant 0 : index
    %3 = vector.load %arg2[%c0_2, %c0_3] : memref<3x128xf32, #tpu.memory_space<vmem>>, vector<1x128xf32>
    %4 = vector.broadcast %2 : vector<128x1xf32> to vector<128x128xf32>
    %5 = vector.broadcast %3 : vector<1x128xf32> to vector<128x128xf32>
    %6 = arith.mulf %4, %5 : vector<128x128xf32>
    %7 = vector.extract_strided_slice %1 {offsets = [0, 1], sizes = [128, 1], strides = [1, 1]} : vector<128x3xf32> to vector<128x1xf32>
    %c1 = arith.constant 1 : index
    %c0_4 = arith.constant 0 : index
    %8 = vector.load %arg2[%c1, %c0_4] : memref<3x128xf32, #tpu.memory_space<vmem>>, vector<1x128xf32>
    %9 = vector.broadcast %7 : vector<128x1xf32> to vector<128x128xf32>
    %10 = vector.broadcast %8 : vector<1x128xf32> to vector<128x128xf32>
    %11 = arith.mulf %9, %10 : vector<128x128xf32>
    %12 = arith.addf %6, %11 : vector<128x128xf32>
    %13 = vector.extract_strided_slice %1 {offsets = [0, 2], sizes = [128, 1], strides = [1, 1]} : vector<128x3xf32> to vector<128x1xf32>
    %c2 = arith.constant 2 : index
    %c0_5 = arith.constant 0 : index
    %14 = vector.load %arg2[%c2, %c0_5] : memref<3x128xf32, #tpu.memory_space<vmem>>, vector<1x128xf32>
    %15 = vector.broadcast %13 : vector<128x1xf32> to vector<128x128xf32>
    %16 = vector.broadcast %14 : vector<1x128xf32> to vector<128x128xf32>
    %17 = arith.mulf %15, %16 : vector<128x128xf32>
    %18 = arith.addf %12, %17 : vector<128x128xf32>
    %c0_6 = arith.constant 0 : index
    %c0_7 = arith.constant 0 : index
    %19 = vector.load %arg3[%c0_6, %c0_7] : memref<1x128xf32, #tpu.memory_space<vmem>>, vector<1x128xf32>
    %20 = vector.broadcast %19 : vector<1x128xf32> to vector<128x128xf32>
    %21 = arith.addf %18, %20 : vector<128x128xf32>
    %cst = arith.constant 0.000000e+00 : f32
    %22 = vector.broadcast %cst : f32 to vector<128x128xf32>
    %23 = arith.maximumf %21, %22 : vector<128x128xf32>
    %24 = arith.truncf %23 : vector<128x128xf32> to vector<128x128xbf16>
    %c0_8 = arith.constant 0 : index
    %c0_9 = arith.constant 0 : index
    %25 = vector.load %arg4[%c0_8, %c0_9] : memref<128x768xbf16, #tpu.memory_space<vmem>>, vector<128x768xbf16>
    %cst_10 = arith.constant dense<0.000000e+00> : vector<128x768xf32>
    %26 = tpu.matmul %24, %25, %cst_10 {dimension_numbers = #tpu.dot_dimension_numbers<[1], [0], [0], [1], [0, 0, 1, 1], [], []>} : vector<128x128xbf16>, vector<128x768xbf16>, vector<128x768xf32> -> vector<128x768xf32>
    %27 = vector.extract_strided_slice %26 {offsets = [0, 0], sizes = [128, 256], strides = [1, 1]} : vector<128x768xf32> to vector<128x256xf32>
    %c0_11 = arith.constant 0 : index
    %c0_12 = arith.constant 0 : index
    %28 = vector.load %arg5[%c0_11, %c0_12] : memref<1x256xf32, #tpu.memory_space<vmem>>, vector<1x256xf32>
    %29 = vector.broadcast %28 : vector<1x256xf32> to vector<128x256xf32>
    %30 = arith.addf %27, %29 : vector<128x256xf32>
    %31 = vector.extract_strided_slice %26 {offsets = [0, 256], sizes = [128, 512], strides = [1, 1]} : vector<128x768xf32> to vector<128x512xf32>
    %32 = vector.shape_cast %30 : vector<128x256xf32> to vector<8x16x256xf32>
    %cst_13 = arith.constant dense<0xFF800000> : vector<8x256xf32>
    %33 = vector.multi_reduction <maximumf>, %32, %cst_13 [1] : vector<8x16x256xf32> to vector<8x256xf32>
    %34 = arith.truncf %33 : vector<8x256xf32> to vector<8x256xbf16>
    %c0_14 = arith.constant 0 : index
    %c0_15 = arith.constant 0 : index
    %35 = vector.load %arg6[%c0_14, %c0_15] : memref<256x512xbf16, #tpu.memory_space<vmem>>, vector<256x512xbf16>
    %cst_16 = arith.constant dense<0.000000e+00> : vector<8x512xf32>
    %36 = tpu.matmul %34, %35, %cst_16 {dimension_numbers = #tpu.dot_dimension_numbers<[1], [0], [0], [1], [0, 0, 1, 1], [], []>} : vector<8x256xbf16>, vector<256x512xbf16>, vector<8x512xf32> -> vector<8x512xf32>
    %37 = vector.shape_cast %31 : vector<128x512xf32> to vector<8x16x512xf32>
    %38 = vector.shape_cast %36 : vector<8x512xf32> to vector<8x1x512xf32>
    %39 = vector.broadcast %38 : vector<8x1x512xf32> to vector<8x16x512xf32>
    %40 = arith.addf %37, %39 : vector<8x16x512xf32>
    %c0_17 = arith.constant 0 : index
    %c0_18 = arith.constant 0 : index
    %41 = vector.load %arg7[%c0_17, %c0_18] : memref<1x512xf32, #tpu.memory_space<vmem>>, vector<1x512xf32>
    %42 = vector.shape_cast %41 : vector<1x512xf32> to vector<1x1x512xf32>
    %43 = vector.broadcast %42 : vector<1x1x512xf32> to vector<8x16x512xf32>
    %44 = arith.addf %40, %43 : vector<8x16x512xf32>
    %cst_19 = arith.constant 0.000000e+00 : f32
    %45 = vector.broadcast %cst_19 : f32 to vector<8x16x512xf32>
    %46 = arith.maximumf %44, %45 : vector<8x16x512xf32>
    %47 = vector.shape_cast %46 : vector<8x16x512xf32> to vector<128x512xf32>
    %48 = arith.truncf %47 : vector<128x512xf32> to vector<128x512xbf16>
    %c0_20 = arith.constant 0 : index
    %c0_21 = arith.constant 0 : index
    %49 = vector.load %arg8[%c0_20, %c0_21] : memref<512x32xbf16, #tpu.memory_space<vmem>>, vector<512x32xbf16>
    %cst_22 = arith.constant dense<0.000000e+00> : vector<128x32xf32>
    %50 = tpu.matmul %48, %49, %cst_22 {dimension_numbers = #tpu.dot_dimension_numbers<[1], [0], [0], [1], [0, 0, 1, 1], [], []>} : vector<128x512xbf16>, vector<512x32xbf16>, vector<128x32xf32> -> vector<128x32xf32>
    %c0_23 = arith.constant 0 : index
    %c0_24 = arith.constant 0 : index
    %51 = vector.load %arg9[%c0_23, %c0_24] : memref<1x32xf32, #tpu.memory_space<vmem>>, vector<1x32xf32>
    %52 = vector.broadcast %51 : vector<1x32xf32> to vector<128x32xf32>
    %53 = arith.addf %50, %52 : vector<128x32xf32>
    %54 = vector.shape_cast %53 : vector<128x32xf32> to vector<8x16x32xf32>
    %cst_25 = arith.constant dense<0xFF800000> : vector<8x32xf32>
    %55 = vector.multi_reduction <maximumf>, %54, %cst_25 [1] : vector<8x16x32xf32> to vector<8x32xf32>
    %56 = vector.shape_cast %55 : vector<8x32xf32> to vector<1x8x32xf32>
    %c0_26 = arith.constant 0 : index
    %c0_27 = arith.constant 0 : index
    %c0_28 = arith.constant 0 : index
    %57 = vector.load %arg10[%c0_26, %c0_27, %c0_28] : memref<1x8x32xf32, #tpu.memory_space<vmem>>, vector<1x8x32xf32>
    tpu.vector_store %arg10[%c0_26, %c0_27, %c0_28], %56 {strides = array<i32>} : memref<1x8x32xf32, #tpu.memory_space<vmem>>, vector<1x8x32xf32>,
    return
  }
  func.func @transform_0(%arg0: i32) -> (i32, i32, i32) {
    %c0_i32 = arith.constant 0 : i32
    %c0_i32_0 = arith.constant 0 : i32
    %c0_i32_1 = arith.constant 0 : i32
    return %arg0, %c0_i32, %c0_i32_0 : i32, i32, i32
  }
  func.func @transform_1(%arg0: i32) -> (i32, i32) {
    %c0_i32 = arith.constant 0 : i32
    %c0_i32_0 = arith.constant 0 : i32
    %c0_i32_1 = arith.constant 0 : i32
    return %c0_i32, %c0_i32_0 : i32, i32
  }
  func.func @transform_2(%arg0: i32) -> (i32, i32) {
    %c0_i32 = arith.constant 0 : i32
    %c0_i32_0 = arith.constant 0 : i32
    %c0_i32_1 = arith.constant 0 : i32
    return %c0_i32, %c0_i32_0 : i32, i32
  }
  func.func @transform_3(%arg0: i32) -> (i32, i32) {
    %c0_i32 = arith.constant 0 : i32
    %c0_i32_0 = arith.constant 0 : i32
    %c0_i32_1 = arith.constant 0 : i32
    return %c0_i32, %c0_i32_0 : i32, i32
  }
  func.func @transform_4(%arg0: i32) -> (i32, i32) {
    %c0_i32 = arith.constant 0 : i32
    %c0_i32_0 = arith.constant 0 : i32
    %c0_i32_1 = arith.constant 0 : i32
    return %c0_i32, %c0_i32_0 : i32, i32
  }
  func.func @transform_5(%arg0: i32) -> (i32, i32) {
    %c0_i32 = arith.constant 0 : i32
    %c0_i32_0 = arith.constant 0 : i32
    %c0_i32_1 = arith.constant 0 : i32
    return %c0_i32, %c0_i32_0 : i32, i32
  }
  func.func @transform_6(%arg0: i32) -> (i32, i32) {
    %c0_i32 = arith.constant 0 : i32
    %c0_i32_0 = arith.constant 0 : i32
    %c0_i32_1 = arith.constant 0 : i32
    return %c0_i32, %c0_i32_0 : i32, i32
  }
  func.func @transform_7(%arg0: i32) -> (i32, i32) {
    %c0_i32 = arith.constant 0 : i32
    %c0_i32_0 = arith.constant 0 : i32
    %c0_i32_1 = arith.constant 0 : i32
    return %c0_i32, %c0_i32_0 : i32, i32
  }
  func.func @transform_8(%arg0: i32) -> (i32, i32) {
    %c0_i32 = arith.constant 0 : i32
    %c0_i32_0 = arith.constant 0 : i32
    %c0_i32_1 = arith.constant 0 : i32
    return %c0_i32, %c0_i32_0 : i32, i32
  }
  func.func @transform_9(%arg0: i32) -> (i32, i32, i32) {
    %c0_i32 = arith.constant 0 : i32
    %c0_i32_0 = arith.constant 0 : i32
    %c0_i32_1 = arith.constant 0 : i32
    return %arg0, %c0_i32, %c0_i32_0 : i32, i32, i32
  }
}

</mosaic_0001>

<bundles_post_ra>
// kernel: tpu_custom_call.1
= control target key start
LH: loop header
LB: loop body
LE: loop exit
PB: predicated region body
PF: predicated region fallthrough
CT: control target
= control target key end

     0   :  { %14 = vsyncpa [#allocation3], 0  ;;  %s4515_s0 = inlined_call_operand.hbm [shape: f32[8,16,3], index: 0, kind: input, shape index: {}]   ;;  %s4516_s1 = inlined_call_operand.hbm [shape: f32[3,128], index: 1, kind: input, shape index: {}]   ;;  %s4517_s2 = inlined_call_operand.hbm [shape: f32[1,128], index: 2, kind: input, shape index: {}]   ;;  %s4518_s3 = inlined_call_operand.hbm [shape: bf16[128,768], index: 3, kind: input, shape index: {}]   ;;  %s4519_s4 = inlined_call_operand.hbm [shape: f32[1,256], index: 4, kind: input, shape index: {}]   ;;  %s4520_s5 = inlined_call_operand.hbm [shape: bf16[256,512], index: 5, kind: input, shape index: {}]   ;;  %s4521_s6 = inlined_call_operand.hbm [shape: f32[1,512], index: 6, kind: input, shape index: {}]   ;;  %s4522_s7 = inlined_call_operand.hbm [shape: bf16[512,32], index: 7, kind: input, shape index: {}]   ;;  %s4523_s8 = inlined_call_operand.hbm [shape: f32[1,32], index: 8, kind: input, shape index: {}]   ;;  %s4524_s9 = inlined_call_operand.hbm [shape: f32[1,8,32], index: 9, kind: output, shape index: {}]  }
   0x1   :  { %15 = vsyncpa [#allocation6], 0 }
   0x2   :  { %16 = vsyncpa [#allocation9], 0 }
   0x3   :  { %17 = vsyncpa [#allocation12], 0 }
   0x4   :  { %18 = vsyncpa [#allocation15], 0 }
   0x5   :  { %19 = vsyncpa [#allocation4], 0  ;;  %s3650_s30 = smov [#allocation5]   ;;  %s3651_s11 = smov [#allocation8]  }
   0x6   :  { %s38_s10 = sshll.u32 %s3650_s30, 4  ;;  %s57_s12 = sshll.u32 %s3651_s11, 4  ;;  %s39_s10 = int_to_ptr.vmem [resolvable:$true] %s38_s10  ;;  %s3722_s12 = int_to_ptr.vmem [resolvable:$true] %s57_s12 }
   0x7   :  { %s3418_s15 = scalar_lea.hbm %s4516_s1, 64 }
   0x8   :  { %p3419_p0 = scmp.ne.s32.totalorder %s4516_s1, %s3418_s15  ;;  %p3422_p1 = scmp.lt.u32.totalorder %s3418_s15, %s4516_s1 }
   0xa   :  { %p3424_p2 = pnand %p3422_p1, %p3419_p0 }
   0xc   :  { %3427 = shalt.err (!%p3424_p2)
}
   0xd   :  { %s3428_s20 = scalar_lea.vmem %s39_s10, 64  ;;  %p3433_p4 = scmp.lt.s32.totalorder %s39_s10, %s39_s10 }
   0xe   :  { %p3429_p3 = scmp.ne.s32.totalorder %s39_s10, %s3428_s20  ;;  %p3434_p5 = scmp.lt.s32.totalorder %s3428_s20, %s3428_s20 }
  0x10   :  { %p3435_p6 = por %p3434_p5, %p3433_p4 }
  0x12   :  { %p3436_p7 = pnand %p3435_p6, %p3429_p3 }
  0x14   :  { %3439 = shalt.err (!%p3436_p7)
}
  0x15   :  { %41 = dma.hbm_to_vmem [thread:$0]  %s4516_s1, 64, %s39_s10, [#allocation6]  }
  0x16   :  { %s3440_s25 = scalar_lea.hbm %s4518_s3, 6144 }
  0x17   :  { %p3441_p8 = scmp.ne.s32.totalorder %s4518_s3, %s3440_s25  ;;  %p3444_p9 = scmp.lt.u32.totalorder %s3440_s25, %s4518_s3 }
  0x19   :  { %p3446_p10 = pnand %p3444_p9, %p3441_p8 }
  0x1b   :  { %3449 = shalt.err (!%p3446_p10)
}
  0x1c   :  { %s3450_s30 = scalar_lea.vmem %s3722_s12, 6144  ;;  %p3455_p12 = scmp.lt.s32.totalorder %s3722_s12, %s3722_s12 }
  0x1d   :  { %p3451_p11 = scmp.ne.s32.totalorder %s3722_s12, %s3450_s30  ;;  %p3456_p13 = scmp.lt.s32.totalorder %s3450_s30, %s3450_s30 }
  0x1f   :  { %p3457_p0 = por %p3456_p13, %p3455_p12 }
  0x21   :  { %p3458_p1 = pnand %p3457_p0, %p3451_p11 }
  0x23   :  { %3461 = shalt.err (!%p3458_p1)
}
  0x24   :  { %s3652_s1 = smov 384   ;;  %s3653_s10 = smov 24  }
  0x25   :  { %63 = dma.hbm_to_vmem [thread:$0]  %s4518_s3, 6144, %s3722_s12, [#allocation9], %s3652_s1, %s3652_s1, %s3653_s10  }
  0x26   :  { %s3654_s14 = smov [#allocation11]   ;;  %s3462_s18 = scalar_lea.hbm %s4520_s5, 8192 }
  0x27   :  { %s79_s15 = sshll.u32 %s3654_s14, 4  ;;  %p3463_p2 = scmp.ne.s32.totalorder %s4520_s5, %s3462_s18  ;;  %s80_s15 = int_to_ptr.vmem [resolvable:$true] %s79_s15 }
  0x28   :  { %p3466_p3 = scmp.lt.u32.totalorder %s3462_s18, %s4520_s5 }
  0x2a   :  { %p3468_p4 = pnand %p3466_p3, %p3463_p2 }
  0x2c   :  { %3471 = shalt.err (!%p3468_p4)
}
  0x2d   :  { %s3472_s23 = scalar_lea.vmem %s80_s15, 8192  ;;  %p3477_p6 = scmp.lt.s32.totalorder %s80_s15, %s80_s15 }
  0x2e   :  { %p3473_p5 = scmp.ne.s32.totalorder %s80_s15, %s3472_s23  ;;  %p3478_p7 = scmp.lt.s32.totalorder %s3472_s23, %s3472_s23 }
  0x30   :  { %p3479_p8 = por %p3478_p7, %p3477_p6 }
  0x32   :  { %p3480_p9 = pnand %p3479_p8, %p3473_p5 }
  0x34   :  { %3483 = shalt.err (!%p3480_p9)
}
  0x35   :  { %s3655_s3 = smov 256   ;;  %s3656_s12 = smov 16  }
  0x36   :  { %85 = dma.hbm_to_vmem [thread:$0]  %s4520_s5, 8192, %s80_s15, [#allocation12], %s3655_s3, %s3655_s3, %s3656_s12  }
  0x37   :  { %s3657_s26 = smov [#allocation14]   ;;  %s3484_s30 = scalar_lea.hbm %s4522_s7, 4096 }
  0x38   :  { %s101_s27 = sshll.u32 %s3657_s26, 4  ;;  %p3485_p10 = scmp.ne.s32.totalorder %s4522_s7, %s3484_s30  ;;  %s102_s27 = int_to_ptr.vmem [resolvable:$true] %s101_s27 }
  0x39   :  { %p3488_p11 = scmp.lt.u32.totalorder %s3484_s30, %s4522_s7 }
  0x3b   :  { %p3490_p12 = pnand %p3488_p11, %p3485_p10 }
  0x3d   :  { %3493 = shalt.err (!%p3490_p12)
}
  0x3e   :  { %s3494_s14 = scalar_lea.vmem %s102_s27, 4096  ;;  %p3499_p0 = scmp.lt.s32.totalorder %s102_s27, %s102_s27 }
  0x3f   :  { %p3495_p13 = scmp.ne.s32.totalorder %s102_s27, %s3494_s14  ;;  %p3500_p1 = scmp.lt.s32.totalorder %s3494_s14, %s3494_s14 }
  0x41   :  { %p3501_p2 = por %p3500_p1, %p3499_p0 }
  0x43   :  { %p3502_p3 = pnand %p3501_p2, %p3495_p13 }
  0x45   :  { %3505 = shalt.err (!%p3502_p3)
}
  0x46   :  { %s3658_s5 = smov 64   ;;  %s3659_s15 = smov 4  }
  0x47   :  { %107 = dma.hbm_to_vmem [thread:$0]  %s4522_s7, 4096, %s102_s27, [#allocation15], %s3658_s5, %s3658_s5, %s3659_s15  }
  0x48   :  { %s3660_s18 = smov [#allocation2]   ;;  %s3506_s22 = scalar_lea.hbm %s4515_s0, 2048 }
  0x49   :  { %s25_s19 = sshll.u32 %s3660_s18, 4  ;;  %p3507_p4 = scmp.ne.s32.totalorder %s4515_s0, %s3506_s22  ;;  %s26_s19 = int_to_ptr.vmem [resolvable:$true] %s25_s19 }
  0x4a   :  { %p3510_p5 = scmp.lt.u32.totalorder %s3506_s22, %s4515_s0 }
  0x4c   :  { %p3512_p6 = pnand %p3510_p5, %p3507_p4 }
  0x4e   :  { %3515 = shalt.err (!%p3512_p6)
}
  0x4f   :  { %s3516_s25 = scalar_lea.vmem %s26_s19, 2048  ;;  %p3521_p8 = scmp.lt.s32.totalorder %s26_s19, %s26_s19 }
  0x50   :  { %p3517_p7 = scmp.ne.s32.totalorder %s26_s19, %s3516_s25  ;;  %p3522_p9 = scmp.lt.s32.totalorder %s3516_s25, %s3516_s25 }
  0x52   :  { %p3523_p10 = por %p3522_p9, %p3521_p8 }
  0x54   :  { %p3524_p11 = pnand %p3523_p10, %p3517_p7 }
  0x56   :  { %3527 = shalt.err (!%p3524_p11)
}
  0x57   :  { %s3661_s7 = smov 128   ;;  %s3662_s26 = smov 8  }
  0x58   :  { %31 = dma.hbm_to_vmem [thread:$0]  %s4515_s0, 2048, %s26_s19, [#allocation3], %s3661_s7, %s3661_s7, %s3662_s26  }
  0x59   :  { %s3663_s29 = smov [#allocation7]   ;;  %s3664_s1 = smov [#allocation10]  }
  0x5a   :  { %s48_s30 = sshll.u32 %s3663_s29, 4  ;;  %s70_s10 = sshll.u32 %s3664_s1, 4  ;;  %s49_s30 = int_to_ptr.vmem [resolvable:$true] %s48_s30  ;;  %s71_s10 = int_to_ptr.vmem [resolvable:$true] %s70_s10 }
  0x5b   :  { %s3528_s14 = scalar_lea.hbm %s4517_s2, 16 }
  0x5c   :  { %p3529_p12 = scmp.ne.s32.totalorder %s4517_s2, %s3528_s14  ;;  %p3532_p13 = scmp.lt.u32.totalorder %s3528_s14, %s4517_s2 }
  0x5e   :  { %p3534_p0 = pnand %p3532_p13, %p3529_p12 }
  0x60   :  { %3537 = shalt.err (!%p3534_p0)
}
  0x61   :  { %s3538_s0 = scalar_lea.vmem %s49_s30, 16  ;;  %s3542_s18 = scalar_lea.vmem %s49_s30, 32 }
  0x62   :  { %p3539_p1 = scmp.ne.s32.totalorder %s49_s30, %s3538_s0  ;;  %p3543_p2 = scmp.lt.s32.totalorder %s49_s30, %s49_s30 }
  0x63   :  { %p3544_p3 = scmp.lt.s32.totalorder %s3542_s18, %s3538_s0 }
  0x65   :  { %p3545_p4 = por %p3544_p3, %p3543_p2 }
  0x67   :  { %p3546_p5 = pnand %p3545_p4, %p3539_p1 }
  0x69   :  { %3549 = shalt.err (!%p3546_p5)
}
  0x6a   :  { %51 = dma.hbm_to_vmem [thread:$0]  %s4517_s2, 16, %s49_s30, [#allocation6]  }
  0x6b   :  { %s3550_s23 = scalar_lea.hbm %s4519_s4, 32 }
  0x6c   :  { %p3551_p6 = scmp.ne.s32.totalorder %s4519_s4, %s3550_s23  ;;  %p3554_p7 = scmp.lt.u32.totalorder %s3550_s23, %s4519_s4 }
  0x6e   :  { %p3556_p8 = pnand %p3554_p7, %p3551_p6 }
  0x70   :  { %3559 = shalt.err (!%p3556_p8)
}
  0x71   :  { %s3560_s7 = scalar_lea.vmem %s71_s10, 32  ;;  %p3565_p10 = scmp.lt.s32.totalorder %s71_s10, %s71_s10 }
  0x72   :  { %p3561_p9 = scmp.ne.s32.totalorder %s71_s10, %s3560_s7  ;;  %p3566_p11 = scmp.lt.s32.totalorder %s3560_s7, %s3560_s7 }
  0x74   :  { %p3567_p12 = por %p3566_p11, %p3565_p10 }
  0x76   :  { %p3568_p13 = pnand %p3567_p12, %p3561_p9 }
  0x78   :  { %3571 = shalt.err (!%p3568_p13)
}
  0x79   :  { %73 = dma.hbm_to_vmem [thread:$0]  %s4519_s4, 32, %s71_s10, [#allocation9]  }
  0x7a   :  { %s3665_s27 = smov [#allocation13]   ;;  %s3666_s29 = smov [#allocation16]  }
  0x7b   :  { %s92_s28 = sshll.u32 %s3665_s27, 4  ;;  %s114_s30 = sshll.u32 %s3666_s29, 4  ;;  %s93_s28 = int_to_ptr.vmem [resolvable:$true] %s92_s28  ;;  %s115_s30 = int_to_ptr.vmem [resolvable:$true] %s114_s30 }
  0x7c   :  { %s3572_s13 = scalar_lea.hbm %s4521_s6, 64 }
  0x7d   :  { %p3573_p0 = scmp.ne.s32.totalorder %s4521_s6, %s3572_s13  ;;  %p3576_p1 = scmp.lt.u32.totalorder %s3572_s13, %s4521_s6 }
  0x7f   :  { %p3578_p2 = pnand %p3576_p1, %p3573_p0 }
  0x81   :  { %3581 = shalt.err (!%p3578_p2)
}
  0x82   :  { %s3582_s4 = scalar_lea.vmem %s93_s28, 64  ;;  %p3587_p4 = scmp.lt.s32.totalorder %s93_s28, %s93_s28 }
  0x83   :  { %p3583_p3 = scmp.ne.s32.totalorder %s93_s28, %s3582_s4  ;;  %p3588_p5 = scmp.lt.s32.totalorder %s3582_s4, %s3582_s4 }
  0x85   :  { %p3589_p6 = por %p3588_p5, %p3587_p4 }
  0x87   :  { %p3590_p7 = pnand %p3589_p6, %p3583_p3 }
  0x89   :  { %3593 = shalt.err (!%p3590_p7)
}
  0x8a   :  { %95 = dma.hbm_to_vmem [thread:$0]  %s4521_s6, 64, %s93_s28, [#allocation12]  }
  0x8b   :  { %s3594_s19 = scalar_lea.hbm %s4523_s8, 16 }
  0x8c   :  { %p3595_p8 = scmp.ne.s32.totalorder %s4523_s8, %s3594_s19  ;;  %p3598_p9 = scmp.lt.u32.totalorder %s3594_s19, %s4523_s8 }
  0x8e   :  { %p3600_p10 = pnand %p3598_p9, %p3595_p8 }
  0x90   :  { %3603 = shalt.err (!%p3600_p10)
}
  0x91   :  { %s3604_s3 = scalar_lea.vmem %s115_s30, 16  ;;  %s3608_s12 = scalar_lea.vmem %s115_s30, 32 }
  0x92   :  { %p3605_p11 = scmp.ne.s32.totalorder %s115_s30, %s3604_s3  ;;  %p3609_p12 = scmp.lt.s32.totalorder %s115_s30, %s115_s30 }
  0x93   :  { %p3610_p13 = scmp.lt.s32.totalorder %s3608_s12, %s3604_s3 }
  0x95   :  { %p3611_p0 = por %p3610_p13, %p3609_p12 }
  0x97   :  { %p3612_p1 = pnand %p3611_p0, %p3605_p11 }
  0x99   :  { %3615 = shalt.err (!%p3612_p1)
}
  0x9a   :  { %117 = dma.hbm_to_vmem [thread:$0]  %s4523_s8, 16, %s115_s30, [#allocation15]  }
  0x9b   :  { %3638 = dma.done.wait [#allocation3], 2048  }
  0x9c   :  { %3639 = vsyncadd [#allocation3], 4294965248 }
  0x9d   :  { %3640 = dma.done.wait [#allocation6], 80  }
  0x9e   :  { %3641 = vsyncadd [#allocation6], 4294967216 }
  0x9f   :  { %3642 = dma.done.wait [#allocation9], 6176  }
  0xa0   :  { %3643 = vsyncadd [#allocation9], 4294961120 }
  0xa1   :  { %3644 = dma.done.wait [#allocation12], 8256  }
  0xa2   :  { %3645 = vsyncadd [#allocation12], 4294959040 }
  0xa3   :  { %3646 = dma.done.wait [#allocation15], 4112  }
  0xa4   :  { %3647 = vsyncadd [#allocation15], 4294963184  ;;  %v3667_v0 = vmov 1   ;;  %v3668_v1 = vmov 0   ;;  %v3841_v2 = vld [vmem:[#allocation2] sm:$0xff]  ;;  %v147_v3 = vld [vmem:[#allocation2 + $0x8] sm:$0xff] }
  0xa5   :  { %3194 = vset.pattern.permute.xlu1 %v3667_v0  ;;  %3193 = vset.pattern.permute.xlu0 %v3668_v1  ;;  %v155_v4 = vld [vmem:[#allocation2 + $0x48] sm:$0xff]  ;;  %v3845_v5 = vld [vmem:[#allocation2 + $0x18] sm:$0xff]  ;;  %v3669_v6 = vmov 2   ;;  %v3848_v7 = vld [vmem:[#allocation2 + $0x40] sm:$0xff]  ;;  %vm1407_vm0 = vcmask 1041409   ;;  %vm1409_vm1 = vcmask 1042434  }
  0xa6   :  { %832 = vmatprep.mubr.bf16.mxu0 %v3668_v1  ;;  %872 = vmatprep.mubr.bf16.mxu1 %v3668_v1  ;;  %v3850_v8 = vld [vmem:[#allocation2 + $0x58] sm:$0xff]  ;;  %v3218_v9 = vld [vmem:[#allocation8 + $0x4] ss:$24 sps:$4 sm:$0xff]   ;;  %v148_v21 = vld [vmem:[#allocation2 + $0x10] sm:$0xff]  ;;  %vm1411_vm2 = vcmask 1043459   ;;  %vm1413_vm3 = vcmask 1044484  }
  0xa7   :  { %265 = vperm.xlu1 %3194, %v3841_v2   ;;  %165 = vperm.xlu0 %3193, %v3841_v2   ;;  %v3220_v10 = vld [vmem:[#allocation8] ss:$24 sps:$4 sm:$0xff]   ;;  %v3221_v12 = vld [vmem:[#allocation8 + $0x34] ss:$24 sps:$4 sm:$0xff]   ;;  %v3223_v13 = vld [vmem:[#allocation8 + $0x30] ss:$24 sps:$4 sm:$0xff]  }
  0xa8   :  { %v3855_v11 = vld [vmem:[#allocation2 + $0x28] sm:$0xff]  ;;  %800 = vmatprep.subr.bf16.mxu0 %v3218_v9  ;;  %3155 = vmatprep.subr.bf16.mxu1 %v3218_v9  ;;  %v3863_v17 = vld [vmem:[#allocation2 + $0x38] sm:$0xff]  ;;  %v156_v30 = vld [vmem:[#allocation2 + $0x50] sm:$0xff]  ;;  %vm1415_vm4 = vcmask 1045509   ;;  %vm1417_vm5 = vcmask 1046534   ;;  %vm1419_vm6 = vcmask 1047559  }
  0xa9   :  { %801 = vmatpush1.bf16.msra.mxu0 %v3220_v10  ;;  %3163 = vmatpush1.bf16.msra.mxu1 %v3220_v10  ;;  %v3860_v14 = vld [vmem:[#allocation2 + $0x68] sm:$0xff]  ;;  %v3227_v18 = vld [vmem:[#allocation8 + $0x94] ss:$24 sps:$4 sm:$0xff]   ;;  %v150_v31 = vld [vmem:[#allocation2 + $0x20] sm:$0xff]  ;;  %vm2769_vm7 = vcmask 261120   ;;  %s3671_s8 = smov [#allocation17]  }
  0xaa   :  { %802 = vmatprep.subr.bf16.mxu0 %v3221_v12  ;;  %3156 = vmatprep.subr.bf16.mxu1 %v3221_v12  ;;  %v3224_v15 = vld [vmem:[#allocation8 + $0x64] ss:$24 sps:$4 sm:$0xff]   ;;  %v3226_v16 = vld [vmem:[#allocation8 + $0x60] ss:$24 sps:$4 sm:$0xff]   ;;  %v3229_v19 = vld [vmem:[#allocation8 + $0x90] ss:$24 sps:$4 sm:$0xff]  }
  0xab   :  { %269 = vperm.xlu1 %3194, %v147_v3   ;;  %170 = vperm.xlu0 %3193, %v147_v3   ;;  %v3867_v20 = vld [vmem:[#allocation2 + $0x78] sm:$0xff]  ;;  %v3230_v22 = vld [vmem:[#allocation8 + $0xc4] ss:$24 sps:$4 sm:$0xff]   ;;  %v152_v33 = vld [vmem:[#allocation2 + $0x30] sm:$0xff]  ;;  %s2865_s25 = sshll.u32 %s3671_s8, 4  ;;  %s2866_s25 = int_to_ptr.vmem [resolvable:$true] %s2865_s25 }
  0xac   :  { %v3232_v23 = vld [vmem:[#allocation8 + $0xc0] ss:$24 sps:$4 sm:$0xff]   ;;  %v3233_v24 = vld [vmem:[#allocation8 + $0xf4] ss:$24 sps:$4 sm:$0xff]   ;;  %v3235_v25 = vld [vmem:[#allocation8 + $0xf0] ss:$24 sps:$4 sm:$0xff]   ;;  %p3621_p3 = scmp.lt.s32.totalorder %s2866_s25, %s2866_s25 }
  0xad   :  { %803 = vmatpush1.bf16.msra.mxu0 %v3223_v13  ;;  %3164 = vmatpush1.bf16.msra.mxu1 %v3223_v13  ;;  %v3236_v26 = vld [vmem:[#allocation8 + $0x124] ss:$24 sps:$4 sm:$0xff]   ;;  %v3238_v27 = vld [vmem:[#allocation8 + $0x120] ss:$24 sps:$4 sm:$0xff]   ;;  %v3239_v28 = vld [vmem:[#allocation8 + $0x154] ss:$24 sps:$4 sm:$0xff]  }
  0xae   :  { %804 = vmatprep.subr.bf16.mxu0 %v3224_v15  ;;  %3157 = vmatprep.subr.bf16.mxu1 %v3224_v15  ;;  %v3241_v29 = vld [vmem:[#allocation8 + $0x150] ss:$24 sps:$4 sm:$0xff]   ;;  %v158_v32 = vld [vmem:[#allocation2 + $0x60] sm:$0xff]  ;;  %v3244_v35 = vld [vmem:[#allocation8 + $0x14] ss:$24 sps:$4 sm:$0xff]   ;;  %s3616_s7 = scalar_lea.vmem %s2866_s25, 128 }
  0xaf   :  { %3195 = vset.pattern.permute.xlu1 %v3669_v6  ;;  %210 = vperm.xlu0 %3193, %v155_v4   ;;  %v160_v34 = vld [vmem:[#allocation2 + $0x70] sm:$0xff]  ;;  %v3910_v50 = vld [vmem:[#allocation5 + $0x1] ss:$0 sm:$0xff]  ;;  %v3912_v51 = vld [vmem:[#allocation5] ss:$0 sm:$0xff]  ;;  %p3617_p2 = scmp.ne.s32.totalorder %s2866_s25, %s3616_s7  ;;  %p3622_p4 = scmp.lt.s32.totalorder %s3616_s7, %s3616_s7 }
  0xb0   :  { %370 = vperm.xlu1 %3195, %v147_v3   ;;  %v3259_v36 = vld [vmem:[#allocation8 + $0xc] ss:$24 sps:$4 sm:$0xff]   ;;  %v3914_v52 = vld [vmem:[#allocation5 + $0x2] ss:$0 sm:$0xff] }
  0xb1   :  { %805 = vmatpush1.bf16.msra.mxu0 %v3226_v16  ;;  %3165 = vmatpush1.bf16.msra.mxu1 %v3226_v16  ;;  %p3623_p5 = por %p3622_p4, %p3621_p3 }
  0xb2   :  { %806 = vmatprep.subr.bf16.mxu0 %v3227_v18  ;;  %3158 = vmatprep.subr.bf16.mxu1 %v3227_v18 }
  0xb3   :  { %180 = vperm.xlu0 %3193, %v3845_v5   ;;  %p3624_p6 = pnand %p3623_p5, %p3617_p2 }
  0xb4   :  { %3196 = vset.pattern.permute.xlu1 %v3668_v1 }
  0xb5   :  { %205 = vperm.xlu1 %3196, %v3848_v7   ;;  %807 = vmatpush1.bf16.msra.mxu0 %v3229_v19 }
  0xb6   :  { %3166 = vmatpush1.bf16.msra.mxu1 %v3229_v19  ;;  %808 = vmatprep.subr.bf16.mxu0 %v3230_v22 }
  0xb7   :  { %220 = vperm.xlu0 %3193, %v3850_v8   ;;  %3159 = vmatprep.subr.bf16.mxu1 %v3230_v22 }
  0xb9   :  { %3197 = vset.pattern.permute.xlu1 %v3667_v0  ;;  %809 = vmatpush1.bf16.msra.mxu0 %v3232_v23 }
  0xba   :  { %297 = vperm.xlu1 %3197, %v3848_v7   ;;  %3167 = vmatpush1.bf16.msra.mxu1 %v3232_v23 }
  0xbb   :  { %190 = vperm.xlu0 %3193, %v3855_v11   ;;  %810 = vmatprep.subr.bf16.mxu0 %v3233_v24 }
  0xbc   :  { %3160 = vmatprep.subr.bf16.mxu1 %v3233_v24 }
  0xbd   :  { %811 = vmatpush1.bf16.msra.mxu0 %v3235_v25 }
  0xbe   :  { %301 = vperm.xlu1 %3197, %v155_v4   ;;  %812 = vmatprep.subr.bf16.mxu0 %v3236_v26 }
  0xbf   :  { %230 = vperm.xlu0 %3193, %v3860_v14   ;;  %3168 = vmatpush1.bf16.msra.mxu1 %v3235_v25 }
  0xc0   :  { %3161 = vmatprep.subr.bf16.mxu1 %v3236_v26 }
  0xc1   :  { %813 = vmatpush1.bf16.msra.mxu0 %v3238_v27 }
  0xc2   :  { %3198 = vset.pattern.permute.xlu1 %v3669_v6  ;;  %814 = vmatprep.subr.bf16.mxu0 %v3239_v28 }
  0xc3   :  { %402 = vperm.xlu1 %3198, %v155_v4   ;;  %200 = vperm.xlu0 %3193, %v3863_v17   ;;  %v3928_v4 = vld [vmem:[#allocation7] ss:$0 sm:$0xff] }
  0xc4   :  { %3169 = vmatpush1.bf16.msra.mxu1 %v3238_v27 }
  0xc5   :  { %3162 = vmatprep.subr.bf16.mxu1 %v3239_v28  ;;  %815 = vmatpush1.bf16.msra.mxu0 %v3241_v29 }
  0xc6   :  { %1026 = vmatprep.subr.bf16.mxu0 %v3244_v35 }
  0xc7   :  { %3199 = vset.pattern.permute.xlu1 %v3668_v1  ;;  %240 = vperm.xlu0 %3193, %v3867_v20  }
  0xc8   :  { %175 = vperm.xlu1 %3199, %v148_v21   ;;  %3170 = vmatpush1.bf16.msra.mxu1 %v3241_v29  ;;  %v3242_v29 = vld [vmem:[#allocation8 + $0x10] ss:$24 sps:$4 sm:$0xff]  }
  0xc9   :  { %913 = vmatprep.subr.bf16.mxu1 %v3259_v36 }
  0xcb   :  { %3215 = vset.pattern.permute.xlu0 %v3669_v6 }
  0xcc   :  { %3200 = vset.pattern.permute.xlu1 %v3667_v0  ;;  %366 = vperm.xlu0 %3215, %v3841_v2  }
  0xcd   :  { %273 = vperm.xlu1 %3200, %v148_v21  }
  0xd0   :  { %398 = vperm.xlu0 %3215, %v3848_v7  }
  0xd1   :  { %277 = vperm.xlu1 %3200, %v3845_v5  }
  0xd4   :  { %374 = vperm.xlu0 %3215, %v148_v21  }
  0xd5   :  { %3201 = vset.pattern.permute.xlu1 %v3669_v6 }
  0xd6   :  { %378 = vperm.xlu1 %3201, %v3845_v5  }
  0xd8   :  { %406 = vperm.xlu0 %3215, %v156_v30  }
  0xda   :  { %3202 = vset.pattern.permute.xlu1 %v3668_v1 }
  0xdb   :  { %215 = vperm.xlu1 %3202, %v156_v30  }
  0xdc   :  { %382 = vperm.xlu0 %3215, %v150_v31  }
  0xdf   :  { %3203 = vset.pattern.permute.xlu1 %v3667_v0 }
  0xe0   :  { %305 = vperm.xlu1 %3203, %v156_v30   ;;  %414 = vperm.xlu0 %3215, %v158_v32  }
  0xe4   :  { %309 = vperm.xlu1 %3203, %v3850_v8   ;;  %390 = vperm.xlu0 %3215, %v152_v33  }
  0xe8   :  { %3204 = vset.pattern.permute.xlu1 %v3669_v6  ;;  %422 = vperm.xlu0 %3215, %v160_v34  }
  0xe9   :  { %410 = vperm.xlu1 %3204, %v3850_v8  }
  0xed   :  { %3205 = vset.pattern.permute.xlu1 %v3668_v1 }
  0xee   :  { %185 = vperm.xlu1 %3205, %v150_v31  }
  0xf2   :  { %3206 = vset.pattern.permute.xlu1 %v3667_v0 }
  0xf3   :  { %281 = vperm.xlu1 %3206, %v150_v31  }
  0xf7   :  { %285 = vperm.xlu1 %3206, %v3855_v11  }
  0xfb   :  { %3207 = vset.pattern.permute.xlu1 %v3669_v6 }
  0xfc   :  { %386 = vperm.xlu1 %3207, %v3855_v11  }
 0x100   :  { %3208 = vset.pattern.permute.xlu1 %v3668_v1 }
 0x101   :  { %225 = vperm.xlu1 %3208, %v158_v32  }
 0x105   :  { %3209 = vset.pattern.permute.xlu1 %v3667_v0 }
 0x106   :  { %313 = vperm.xlu1 %3209, %v158_v32  }
 0x10a   :  { %317 = vperm.xlu1 %3209, %v3860_v14  }
 0x10e   :  { %3210 = vset.pattern.permute.xlu1 %v3669_v6 }
 0x10f   :  { %418 = vperm.xlu1 %3210, %v3860_v14  }
 0x113   :  { %3211 = vset.pattern.permute.xlu1 %v3668_v1 }
 0x114   :  { %195 = vperm.xlu1 %3211, %v152_v33  }
 0x118   :  { %3212 = vset.pattern.permute.xlu1 %v3667_v0 }
 0x119   :  { %289 = vperm.xlu1 %3212, %v152_v33  }
 0x11d   :  { %293 = vperm.xlu1 %3212, %v3863_v17  }
 0x121   :  { %3213 = vset.pattern.permute.xlu1 %v3669_v6 }
 0x122   :  { %394 = vperm.xlu1 %3213, %v3863_v17  }
 0x126   :  { %3214 = vset.pattern.permute.xlu1 %v3668_v1  ;;  %v266_v37 = vpop.permute.xlu1 %265  ;;  %v166_v38 = vpop.permute.xlu0 %165 }
 0x127   :  { %235 = vperm.xlu1 %3214, %v160_v34   ;;  %v332_v63 = vmul.f32 %v3910_v50, %v266_v37 }
 0x12a   :  { %v270_v39 = vpop.permute.xlu1 %269  ;;  %v171_v40 = vpop.permute.xlu0 %170 }
 0x12b   :  { %3216 = vset.pattern.permute.xlu1 %v3667_v0  ;;  %v333_v55 = vmul.f32 %v3910_v50, %v270_v39  ;;  %v248_v56 = vmul.f32 %v3912_v51, %v171_v40  ;;  %v247_v0 = vmul.f32 %v3912_v51, %v166_v38 }
 0x12c   :  { %321 = vperm.xlu1 %3216, %v160_v34   ;;  %v3247_v34 = vld [vmem:[#allocation8 + $0x44] ss:$24 sps:$4 sm:$0xff]  }
 0x12d   :  { %v349_v59 = vadd.f32 %v333_v55, %v248_v56  ;;  %v348_v7 = vadd.f32 %v332_v63, %v247_v0  ;;  %v3271_v0 = vld [vmem:[#allocation8 + $0x6c] ss:$24 sps:$4 sm:$0xff]  }
 0x12e   :  { %v211_v41 = vpop.permute.xlu0 %210 }
 0x12f   :  { %v371_v42 = vpop.permute.xlu1 %370  ;;  %v256_v60 = vmul.f32 %v3912_v51, %v211_v41  ;;  %v3245_v41 = vld [vmem:[#allocation8 + $0x40] ss:$24 sps:$4 sm:$0xff]  }
 0x130   :  { %325 = vperm.xlu1 %3216, %v3867_v20   ;;  %v434_v57 = vmul.f32 %v3914_v52, %v371_v42 }
 0x132   :  { %v181_v43 = vpop.permute.xlu0 %180  ;;  %v450_v2 = vadd.f32 %v434_v57, %v349_v59  ;;  %v3248_v57 = vld [vmem:[#allocation8 + $0x70] ss:$24 sps:$4 sm:$0xff]  }
 0x133   :  { %v250_v22 = vmul.f32 %v3912_v51, %v181_v43 }
 0x134   :  { %3217 = vset.pattern.permute.xlu1 %v3669_v6  ;;  %v206_v44 = vpop.permute.xlu1 %205  ;;  %v473_v11 = vadd.f32 %v3928_v4, %v450_v2 }
 0x135   :  { %426 = vperm.xlu1 %3217, %v3867_v20   ;;  %v255_v13 = vmul.f32 %v3912_v51, %v206_v44 }
 0x136   :  { %v3904_v45 = vpop.permute.xlu0 %220  ;;  %v489_v21 = vmax.f32 %v473_v11, 0.0 }
 0x139   :  { %v298_v46 = vpop.permute.xlu1 %297 }
 0x13a   :  { %v3906_v47 = vpop.permute.xlu0 %190  ;;  %v340_v8 = vmul.f32 %v3910_v50, %v298_v46  ;;  %v3250_v46 = vld [vmem:[#allocation8 + $0x74] ss:$24 sps:$4 sm:$0xff]  }
 0x13c   :  { %v356_v16 = vadd.f32 %v340_v8, %v255_v13 }
 0x13d   :  { %v302_v48 = vpop.permute.xlu1 %301 }
 0x13e   :  { %v3908_v49 = vpop.permute.xlu0 %230  ;;  %v341_v61 = vmul.f32 %v3910_v50, %v302_v48  ;;  %v3257_v48 = vld [vmem:[#allocation8 + $0x8] ss:$24 sps:$4 sm:$0xff]  }
 0x140   :  { %v357_v5 = vadd.f32 %v341_v61, %v256_v60  ;;  %v3253_v61 = vld [vmem:[#allocation8 + $0xa4] ss:$24 sps:$4 sm:$0xff]  }
 0x142   :  { %v403_v53 = vpop.permute.xlu1 %402  ;;  %v3916_v54 = vpop.permute.xlu0 %200 }
 0x143   :  { %v442_v3 = vmul.f32 %v3914_v52, %v403_v53  ;;  %v3265_v53 = vld [vmem:[#allocation8 + $0x3c] ss:$24 sps:$4 sm:$0xff]  }
 0x145   :  { %v458_v12 = vadd.f32 %v442_v3, %v357_v5  ;;  %v3251_v3 = vld [vmem:[#allocation8 + $0xa0] ss:$24 sps:$4 sm:$0xff]  }
 0x146   :  { %v3921_v58 = vpop.permute.xlu0 %240 }
 0x147   :  { %v176_v62 = vpop.permute.xlu1 %175  ;;  %v481_v23 = vadd.f32 %v3928_v4, %v458_v12 }
 0x148   :  { %v249_v24 = vmul.f32 %v3912_v51, %v176_v62  ;;  %v3263_v62 = vld [vmem:[#allocation8 + $0x38] ss:$24 sps:$4 sm:$0xff]  }
 0x149   :  { %v497_v35 = vmax.f32 %v481_v23, 0.0  ;;  %v3268_v23 = vld [vmem:[#allocation8 + $0x134] ss:$24 sps:$4 sm:$0xff]  }
 0x14b   :  { %v367_v6 = vpop.permute.xlu0 %366 }
 0x14c   :  { %v433_v9 = vmul.f32 %v3914_v52, %v367_v6  ;;  %v274_v10 = vpop.permute.xlu1 %273 }
 0x14d   :  { %v334_v18 = vmul.f32 %v3910_v50, %v274_v10  ;;  %v3277_v10 = vld [vmem:[#allocation8 + $0x9c] ss:$24 sps:$4 sm:$0xff]  }
 0x14e   :  { %v449_v14 = vadd.f32 %v433_v9, %v348_v7  ;;  %v3256_v7 = vld [vmem:[#allocation8 + $0xd4] ss:$24 sps:$4 sm:$0xff]   ;;  %v3269_v9 = vld [vmem:[#allocation8 + $0x68] ss:$24 sps:$4 sm:$0xff]  }
 0x14f   :  { %v399_v15 = vpop.permute.xlu0 %398  ;;  %v350_v30 = vadd.f32 %v334_v18, %v249_v24  ;;  %v3275_v18 = vld [vmem:[#allocation8 + $0x98] ss:$24 sps:$4 sm:$0xff]  }
 0x150   :  { %v472_v17 = vadd.f32 %v3928_v4, %v449_v14  ;;  %v441_v19 = vmul.f32 %v3914_v52, %v399_v15  ;;  %v278_v20 = vpop.permute.xlu1 %277  ;;  %v3254_v14 = vld [vmem:[#allocation8 + $0xd0] ss:$24 sps:$4 sm:$0xff]   ;;  %v3262_v15 = vld [vmem:[#allocation8 + $0x104] ss:$24 sps:$4 sm:$0xff]  }
 0x151   :  { %v335_v27 = vmul.f32 %v3910_v50, %v278_v20 }
 0x152   :  { %v488_v25 = vmax.f32 %v472_v17, 0.0  ;;  %v457_v26 = vadd.f32 %v441_v19, %v356_v16  ;;  %v258_v16 = vmul.f32 %v3912_v51, %v3904_v45  ;;  %v3280_v19 = vld [vmem:[#allocation8 + $0xcc] ss:$24 sps:$4 sm:$0xff]  }
 0x153   :  { %v375_v28 = vpop.permute.xlu0 %374  ;;  %v351_v38 = vadd.f32 %v335_v27, %v250_v22  ;;  %v3283_v27 = vld [vmem:[#allocation8 + $0xfc] ss:$24 sps:$4 sm:$0xff]  }
 0x154   :  { %v480_v31 = vadd.f32 %v3928_v4, %v457_v26  ;;  %v435_v32 = vmul.f32 %v3914_v52, %v375_v28  ;;  %v3943_v33 = vpack.c.bf16 %v489_v21, %v488_v25  ;;  %v3260_v21 = vld [vmem:[#allocation8 + $0x100] ss:$24 sps:$4 sm:$0xff]  }
 0x155   :  { %v379_v36 = vpop.permute.xlu1 %378  ;;  %v3278_v26 = vld [vmem:[#allocation8 + $0xc8] ss:$24 sps:$4 sm:$0xff]  }
 0x156   :  { %v496_v37 = vmax.f32 %v480_v31, 0.0  ;;  %v451_v39 = vadd.f32 %v435_v32, %v350_v30  ;;  %v436_v40 = vmul.f32 %v3914_v52, %v379_v36  ;;  %833 = vmatmul.mubr.bf16.vlgmr.msra.gmra.mrb[0].mxu0 %v3943_v33  ;;  %v3274_v30 = vld [vmem:[#allocation8 + $0x164] ss:$24 sps:$4 sm:$0xff]  }
 0x157   :  { %842 = vmatprep.mubr.bf16.mxu0 %v3668_v1  ;;  %1027 = vmatpush1.bf16.msra.mxu0 %v3242_v29  ;;  %v407_v6 = vpop.permute.xlu0 %406  ;;  %v3266_v29 = vld [vmem:[#allocation8 + $0x130] ss:$24 sps:$4 sm:$0xff]  }
 0x158   :  { %v474_v42 = vadd.f32 %v3928_v4, %v451_v39  ;;  %v452_v43 = vadd.f32 %v436_v40, %v351_v38  ;;  %v3949_v44 = vpack.c.bf16 %v497_v35, %v496_v37  ;;  %1028 = vmatprep.subr.bf16.mxu0 %v3247_v34  ;;  %v443_v12 = vmul.f32 %v3914_v52, %v407_v6  ;;  %v3281_v34 = vld [vmem:[#allocation8 + $0xf8] ss:$24 sps:$4 sm:$0xff]   ;;  %v3286_v35 = vld [vmem:[#allocation8 + $0x12c] ss:$24 sps:$4 sm:$0xff]   ;;  %v3284_v40 = vld [vmem:[#allocation8 + $0x128] ss:$24 sps:$4 sm:$0xff]  }
 0x159   :  { %v3272_v38 = vld [vmem:[#allocation8 + $0x160] ss:$24 sps:$4 sm:$0xff]  }
 0x15a   :  { %v475_v55 = vadd.f32 %v3928_v4, %v452_v43  ;;  %v216_v56 = vpop.permute.xlu1 %215  ;;  %873 = vmatmul.mubr.bf16.vlgmr.msra.gmra.mrb[0].mxu1 %v3949_v44  ;;  %v490_v59 = vmax.f32 %v474_v42, 0.0  ;;  %v3289_v42 = vld [vmem:[#allocation8 + $0x15c] ss:$24 sps:$4 sm:$0xff]  }
 0x15b   :  { %882 = vmatprep.mubr.bf16.mxu1 %v3668_v1  ;;  %1029 = vmatpush1.bf16.msra.mxu0 %v3245_v41  ;;  %v257_v8 = vmul.f32 %v3912_v51, %v216_v56 }
 0x15c   :  { %v491_v60 = vmax.f32 %v475_v55, 0.0  ;;  %1030 = vmatprep.subr.bf16.mxu0 %v3250_v46  ;;  %914 = vmatpush1.bf16.msra.mxu1 %v3257_v48  ;;  %v383_v46 = vpop.permute.xlu0 %382 }
 0x15d   :  { %915 = vmatprep.subr.bf16.mxu1 %v3265_v53  ;;  %v3287_v53 = vld [vmem:[#allocation8 + $0x158] ss:$24 sps:$4 sm:$0xff]   ;;  %v437_v56 = vmul.f32 %v3914_v52, %v383_v46 }
 0x15e   :  { %v3954_v63 = vpack.c.bf16 %v491_v60, %v490_v59  ;;  %v252_v60 = vmul.f32 %v3912_v51, %v3906_v47 }
 0x15f   :  { %v306_v2 = vpop.permute.xlu1 %305  ;;  %1031 = vmatpush1.bf16.msra.mxu0 %v3248_v57 }
 0x160   :  { %v342_v5 = vmul.f32 %v3910_v50, %v306_v2  ;;  %843 = vmatmul.mubr.bf16.gmra.mrb[4].mxu0 %v3954_v63  ;;  %1032 = vmatprep.subr.bf16.mxu0 %v3253_v61  ;;  %v415_v47 = vpop.permute.xlu0 %414 }
 0x161   :  { %852 = vmatprep.mubr.bf16.mxu0 %v3668_v1  ;;  %916 = vmatpush1.bf16.msra.mxu1 %v3263_v62 }
 0x162   :  { %917 = vmatprep.subr.bf16.mxu1 %v3271_v0  ;;  %v358_v11 = vadd.f32 %v342_v5, %v257_v8 }
 0x163   :  { %v310_v13 = vpop.permute.xlu1 %309  ;;  %1033 = vmatpush1.bf16.msra.mxu0 %v3251_v3 }
 0x164   :  { %1034 = vmatprep.subr.bf16.mxu0 %v3256_v7  ;;  %v343_v17 = vmul.f32 %v3910_v50, %v310_v13  ;;  %v459_v20 = vadd.f32 %v443_v12, %v358_v11 }
 0x165   :  { %918 = vmatpush1.bf16.msra.mxu1 %v3269_v9 }
 0x166   :  { %919 = vmatprep.subr.bf16.mxu1 %v3277_v10  ;;  %v359_v24 = vadd.f32 %v343_v17, %v258_v16  ;;  %v482_v45 = vadd.f32 %v3928_v4, %v459_v20 }
 0x167   :  { %1035 = vmatpush1.bf16.msra.mxu0 %v3254_v14 }
 0x168   :  { %v411_v22 = vpop.permute.xlu1 %410  ;;  %1036 = vmatprep.subr.bf16.mxu0 %v3262_v15  ;;  %v498_v36 = vmax.f32 %v482_v45, 0.0  ;;  %v445_v15 = vmul.f32 %v3914_v52, %v415_v47 }
 0x169   :  { %v444_v25 = vmul.f32 %v3914_v52, %v411_v22  ;;  %920 = vmatpush1.bf16.msra.mxu1 %v3275_v18  ;;  %v260_v18 = vmul.f32 %v3912_v51, %v3908_v49 }
 0x16a   :  { %921 = vmatprep.subr.bf16.mxu1 %v3280_v19 }
 0x16b   :  { %v460_v28 = vadd.f32 %v444_v25, %v359_v24  ;;  %1037 = vmatpush1.bf16.msra.mxu0 %v3260_v21 }
 0x16c   :  { %1038 = vmatprep.subr.bf16.mxu0 %v3268_v23 }
 0x16d   :  { %v483_v31 = vadd.f32 %v3928_v4, %v460_v28  ;;  %v186_v32 = vpop.permute.xlu1 %185  ;;  %922 = vmatpush1.bf16.msra.mxu1 %v3278_v26 }
 0x16e   :  { %923 = vmatprep.subr.bf16.mxu1 %v3283_v27  ;;  %v251_v48 = vmul.f32 %v3912_v51, %v186_v32 }
 0x16f   :  { %v499_v37 = vmax.f32 %v483_v31, 0.0  ;;  %1039 = vmatpush1.bf16.msra.mxu0 %v3266_v29 }
 0x170   :  { %1040 = vmatprep.subr.bf16.mxu0 %v3274_v30 }
 0x171   :  { %v3967_v39 = vpack.c.bf16 %v499_v37, %v498_v36  ;;  %924 = vmatpush1.bf16.msra.mxu1 %v3281_v34  ;;  %v391_v34 = vpop.permute.xlu0 %390  ;;  %v254_v37 = vmul.f32 %v3912_v51, %v3916_v54 }
 0x172   :  { %v282_v41 = vpop.permute.xlu1 %281  ;;  %925 = vmatprep.subr.bf16.mxu1 %v3286_v35  ;;  %v439_v35 = vmul.f32 %v3914_v52, %v391_v34  ;;  %v3332_v34 = vld [vmem:[#allocation11 + $0xe0] ss:$16 sps:$4 sm:$0xff]  }
 0x173   :  { %v336_v43 = vmul.f32 %v3910_v50, %v282_v41  ;;  %883 = vmatmul.mubr.bf16.gmra.mrb[4].mxu1 %v3967_v39  ;;  %1041 = vmatpush1.bf16.msra.mxu0 %v3272_v38 }
 0x174   :  { %892 = vmatprep.mubr.bf16.mxu1 %v3668_v1 }
 0x175   :  { %926 = vmatpush1.bf16.msra.mxu1 %v3284_v40  ;;  %v352_v55 = vadd.f32 %v336_v43, %v251_v48 }
 0x176   :  { %v286_v57 = vpop.permute.xlu1 %285  ;;  %927 = vmatprep.subr.bf16.mxu1 %v3289_v42 }
 0x177   :  { %v337_v59 = vmul.f32 %v3910_v50, %v286_v57  ;;  %v453_v61 = vadd.f32 %v437_v56, %v352_v55 }
 0x179   :  { %928 = vmatpush1.bf16.msra.mxu1 %v3287_v53  ;;  %v353_v0 = vadd.f32 %v337_v59, %v252_v60  ;;  %v476_v3 = vadd.f32 %v3928_v4, %v453_v61  ;;  %v423_v61 = vpop.permute.xlu0 %422 }
 0x17b   :  { %v387_v62 = vpop.permute.xlu1 %386  ;;  %v492_v8 = vmax.f32 %v476_v3, 0.0 }
 0x17c   :  { %v438_v2 = vmul.f32 %v3914_v52, %v387_v62 }
 0x17e   :  { %v454_v5 = vadd.f32 %v438_v2, %v353_v0  ;;  %v447_v2 = vmul.f32 %v3914_v52, %v423_v61  ;;  %v1141_v61 = vlaneseq }
 0x180   :  { %v477_v6 = vadd.f32 %v3928_v4, %v454_v5  ;;  %v226_v7 = vpop.permute.xlu1 %225  ;;  %v262_v5 = vmul.f32 %v3912_v51, %v3921_v58  ;;  %v3290_v58 = vld [vmem:[#allocation11] ss:$16 sps:$4 sm:$0xff]  }
 0x181   :  { %v259_v13 = vmul.f32 %v3912_v51, %v226_v7 }
 0x182   :  { %v493_v9 = vmax.f32 %v477_v6, 0.0 }
 0x184   :  { %v3980_v10 = vpack.c.bf16 %v493_v9, %v492_v8 }
 0x185   :  { %v314_v11 = vpop.permute.xlu1 %313 }
 0x186   :  { %v344_v12 = vmul.f32 %v3910_v50, %v314_v11  ;;  %853 = vmatmul.mubr.bf16.gmra.mrb[8].mxu0 %v3980_v10 }
 0x187   :  { %862 = vmatprep.mubr.bf16.mxu0 %v3668_v1 }
 0x188   :  { %v360_v14 = vadd.f32 %v344_v12, %v259_v13 }
 0x189   :  { %v318_v16 = vpop.permute.xlu1 %317 }
 0x18a   :  { %v345_v17 = vmul.f32 %v3910_v50, %v318_v16  ;;  %v461_v19 = vadd.f32 %v445_v15, %v360_v14  ;;  %v3304_v15 = vld [vmem:[#allocation11 + $0x44] ss:$16 sps:$4 sm:$0xff]   ;;  %v3307_v16 = vld [vmem:[#allocation11 + $0x4c] ss:$16 sps:$4 sm:$0xff]  }
 0x18c   :  { %v361_v21 = vadd.f32 %v345_v17, %v260_v18  ;;  %v484_v23 = vadd.f32 %v3928_v4, %v461_v19  ;;  %v3302_v17 = vld [vmem:[#allocation11 + $0x40] ss:$16 sps:$4 sm:$0xff]   ;;  %v3305_v18 = vld [vmem:[#allocation11 + $0x48] ss:$16 sps:$4 sm:$0xff]   ;;  %v3313_v19 = vld [vmem:[#allocation11 + $0x6c] ss:$16 sps:$4 sm:$0xff]  }
 0x18e   :  { %v419_v20 = vpop.permute.xlu1 %418  ;;  %v500_v27 = vmax.f32 %v484_v23, 0.0  ;;  %v3319_v23 = vld [vmem:[#allocation11 + $0x8c] ss:$16 sps:$4 sm:$0xff]  }
 0x18f   :  { %v446_v22 = vmul.f32 %v3914_v52, %v419_v20  ;;  %v3308_v20 = vld [vmem:[#allocation11 + $0x60] ss:$16 sps:$4 sm:$0xff]  }
 0x191   :  { %v462_v24 = vadd.f32 %v446_v22, %v361_v21  ;;  %v3311_v21 = vld [vmem:[#allocation11 + $0x68] ss:$16 sps:$4 sm:$0xff]   ;;  %v3316_v22 = vld [vmem:[#allocation11 + $0x84] ss:$16 sps:$4 sm:$0xff]  }
 0x193   :  { %v485_v25 = vadd.f32 %v3928_v4, %v462_v24  ;;  %v196_v26 = vpop.permute.xlu1 %195  ;;  %v3314_v24 = vld [vmem:[#allocation11 + $0x80] ss:$16 sps:$4 sm:$0xff]  }
 0x194   :  { %v253_v49 = vmul.f32 %v3912_v51, %v196_v26  ;;  %v3325_v26 = vld [vmem:[#allocation11 + $0xac] ss:$16 sps:$4 sm:$0xff]  }
 0x195   :  { %v501_v45 = vmax.f32 %v485_v25, 0.0  ;;  %v3317_v25 = vld [vmem:[#allocation11 + $0x88] ss:$16 sps:$4 sm:$0xff]  }
 0x197   :  { %v3993_v28 = vpack.c.bf16 %v501_v45, %v500_v27  ;;  %v3320_v27 = vld [vmem:[#allocation11 + $0xa0] ss:$16 sps:$4 sm:$0xff]   ;;  %v3323_v45 = vld [vmem:[#allocation11 + $0xa8] ss:$16 sps:$4 sm:$0xff]  }
 0x198   :  { %v290_v29 = vpop.permute.xlu1 %289 }
 0x199   :  { %v338_v30 = vmul.f32 %v3910_v50, %v290_v29  ;;  %893 = vmatmul.mubr.bf16.gmra.mrb[8].mxu1 %v3993_v28  ;;  %v3331_v29 = vld [vmem:[#allocation11 + $0xcc] ss:$16 sps:$4 sm:$0xff]  }
 0x19a   :  { %902 = vmatprep.mubr.bf16.mxu1 %v3668_v1 }
 0x19b   :  { %v354_v31 = vadd.f32 %v338_v30, %v253_v49  ;;  %v3326_v30 = vld [vmem:[#allocation11 + $0xc0] ss:$16 sps:$4 sm:$0xff]   ;;  %v3329_v49 = vld [vmem:[#allocation11 + $0xc8] ss:$16 sps:$4 sm:$0xff]  }
 0x19c   :  { %v294_v32 = vpop.permute.xlu1 %293 }
 0x19d   :  { %v339_v36 = vmul.f32 %v3910_v50, %v294_v32  ;;  %v455_v38 = vadd.f32 %v439_v35, %v354_v31  ;;  %v3334_v31 = vld [vmem:[#allocation11 + $0xe4] ss:$16 sps:$4 sm:$0xff]   ;;  %v3337_v32 = vld [vmem:[#allocation11 + $0xec] ss:$16 sps:$4 sm:$0xff]   ;;  %v3335_v35 = vld [vmem:[#allocation11 + $0xe8] ss:$16 sps:$4 sm:$0xff]  }
 0x19f   :  { %v355_v41 = vadd.f32 %v339_v36, %v254_v37  ;;  %v478_v46 = vadd.f32 %v3928_v4, %v455_v38  ;;  %v3340_v36 = vld [vmem:[#allocation11 + $0x104] ss:$16 sps:$4 sm:$0xff]   ;;  %v3343_v37 = vld [vmem:[#allocation11 + $0x10c] ss:$16 sps:$4 sm:$0xff]   ;;  %v3338_v38 = vld [vmem:[#allocation11 + $0x100] ss:$16 sps:$4 sm:$0xff]  }
 0x1a1   :  { %v395_v40 = vpop.permute.xlu1 %394  ;;  %v494_v56 = vmax.f32 %v478_v46, 0.0  ;;  %v3347_v46 = vld [vmem:[#allocation11 + $0x128] ss:$16 sps:$4 sm:$0xff]  }
 0x1a2   :  { %v440_v42 = vmul.f32 %v3914_v52, %v395_v40  ;;  %v3341_v40 = vld [vmem:[#allocation11 + $0x108] ss:$16 sps:$4 sm:$0xff]  }
 0x1a4   :  { %v456_v43 = vadd.f32 %v440_v42, %v355_v41  ;;  %v3346_v41 = vld [vmem:[#allocation11 + $0x124] ss:$16 sps:$4 sm:$0xff]   ;;  %v3349_v42 = vld [vmem:[#allocation11 + $0x12c] ss:$16 sps:$4 sm:$0xff]  }
 0x1a6   :  { %v479_v48 = vadd.f32 %v3928_v4, %v456_v43  ;;  %v236_v53 = vpop.permute.xlu1 %235  ;;  %v3344_v43 = vld [vmem:[#allocation11 + $0x120] ss:$16 sps:$4 sm:$0xff]  }
 0x1a7   :  { %v261_v54 = vmul.f32 %v3912_v51, %v236_v53  ;;  %v3292_v51 = vld [vmem:[#allocation11 + $0x4] ss:$16 sps:$4 sm:$0xff]   ;;  %v3355_v53 = vld [vmem:[#allocation11 + $0x14c] ss:$16 sps:$4 sm:$0xff]  }
 0x1a8   :  { %v495_v55 = vmax.f32 %v479_v48, 0.0  ;;  %1752 = vmatprep.subr.bf16.mxu1 %v3292_v51  ;;  %v3352_v48 = vld [vmem:[#allocation11 + $0x144] ss:$16 sps:$4 sm:$0xff]   ;;  %v3377_v51 = vld [vmem:[#allocation11 + $0x1c8] ss:$16 sps:$4 sm:$0xff]  }
 0x1aa   :  { %v507_v57 = vpack.c.bf16 %v495_v55, %v494_v56  ;;  %v3350_v55 = vld [vmem:[#allocation11 + $0x140] ss:$16 sps:$4 sm:$0xff]   ;;  %v3353_v56 = vld [vmem:[#allocation11 + $0x148] ss:$16 sps:$4 sm:$0xff]  }
 0x1ab   :  { %v322_v59 = vpop.permute.xlu1 %321 }
 0x1ac   :  { %v346_v60 = vmul.f32 %v3910_v50, %v322_v59  ;;  %863 = vmatmul.mubr.bf16.gmra.mrb[12].mxu0 %v507_v57  ;;  %v3361_v59 = vld [vmem:[#allocation11 + $0x16c] ss:$16 sps:$4 sm:$0xff]  }
 0x1ad   :  { %1058 = vmatprep.mubr.bf16.mxu0 %v3668_v1 }
 0x1ae   :  { %v362_v62 = vadd.f32 %v346_v60, %v261_v54  ;;  %v3356_v60 = vld [vmem:[#allocation11 + $0x160] ss:$16 sps:$4 sm:$0xff]   ;;  %v3359_v54 = vld [vmem:[#allocation11 + $0x168] ss:$16 sps:$4 sm:$0xff]  }
 0x1af   :  { %v326_v0 = vpop.permute.xlu1 %325 }
 0x1b0   :  { %v347_v3 = vmul.f32 %v3910_v50, %v326_v0  ;;  %v463_v6 = vadd.f32 %v447_v2, %v362_v62  ;;  %v3364_v62 = vld [vmem:[#allocation11 + $0x184] ss:$16 sps:$4 sm:$0xff]   ;;  %v3367_v0 = vld [vmem:[#allocation11 + $0x18c] ss:$16 sps:$4 sm:$0xff]   ;;  %v3362_v2 = vld [vmem:[#allocation11 + $0x180] ss:$16 sps:$4 sm:$0xff]  }
 0x1b2   :  { %v363_v8 = vadd.f32 %v347_v3, %v262_v5  ;;  %v486_v12 = vadd.f32 %v3928_v4, %v463_v6  ;;  %v3365_v3 = vld [vmem:[#allocation11 + $0x188] ss:$16 sps:$4 sm:$0xff]   ;;  %v4048_v5 = vshrl.u32 %v1141_v61, 7  ;;  %v3370_v6 = vld [vmem:[#allocation11 + $0x1a4] ss:$16 sps:$4 sm:$0xff]  }
 0x1b4   :  { %v427_v7 = vpop.permute.xlu1 %426  ;;  %1059 = vmatmul.mubr.bf16.vlgmr.msra.gmra.mrb[16].mxu0 %v3943_v33  ;;  %v502_v14 = vmax.f32 %v486_v12, 0.0  ;;  %v1139_v12 = vld [vmem:[#allocation10] sm:$0x3] }
 0x1b5   :  { %v448_v9 = vmul.f32 %v3914_v52, %v427_v7  ;;  %1068 = vmatprep.mubr.bf16.mxu0 %v3668_v1  ;;  %v3295_v52 = vld [vmem:[#allocation11 + $0xc] ss:$16 sps:$4 sm:$0xff]  }
 0x1b6   :  { %1793 = vmatprep.subr.bf16.mxu0 %v3295_v52  ;;  %v3373_v7 = vld [vmem:[#allocation11 + $0x1ac] ss:$16 sps:$4 sm:$0xff]  }
 0x1b7   :  { %v464_v11 = vadd.f32 %v448_v9, %v363_v8  ;;  %v3368_v8 = vld [vmem:[#allocation11 + $0x1a0] ss:$16 sps:$4 sm:$0xff]   ;;  %v3371_v9 = vld [vmem:[#allocation11 + $0x1a8] ss:$16 sps:$4 sm:$0xff]  }
 0x1b9   :  { %v487_v47 = vadd.f32 %v3928_v4, %v464_v11  ;;  %v3293_v4 = vld [vmem:[#allocation11 + $0x8] ss:$16 sps:$4 sm:$0xff]   ;;  %v4051_v11 = vsub.s32 0, %v4048_v5 }
 0x1ba   :  { %1794 = vmatpush1.bf16.msra.mxu0 %v3293_v4  ;;  %v3385_v4 = vld [vmem:[#allocation11 + $0x1ec] ss:$16 sps:$4 sm:$0xff]  }
 0x1bb   :  { %v503_v13 = vmax.f32 %v487_v47, 0.0  ;;  %v3376_v47 = vld [vmem:[#allocation11 + $0x1c4] ss:$16 sps:$4 sm:$0xff]   ;;  %v4057_v52 = vrot.slane %v1139_v12, %v4051_v11 }
 0x1bc   :  { %1069 = vmatmul.mubr.bf16.gmra.mrb[20].mxu0 %v3954_v63 }
 0x1bd   :  { %v4019_v50 = vpack.c.bf16 %v503_v13, %v502_v14  ;;  %1078 = vmatprep.mubr.bf16.mxu0 %v3668_v1  ;;  %v3379_v13 = vld [vmem:[#allocation11 + $0x1cc] ss:$16 sps:$4 sm:$0xff]   ;;  %v4054_v14 = vsub.s32 1, %v4048_v5 }
 0x1bf   :  { %903 = vmatmul.mubr.bf16.gmra.mrb[12].mxu1 %v4019_v50 }
 0x1c0   :  { %945 = vmatprep.mubr.bf16.mxu1 %v3668_v1 }
 0x1c4   :  { %1079 = vmatmul.mubr.bf16.gmra.mrb[24].mxu0 %v3980_v10 }
 0x1c5   :  { %1088 = vmatprep.mubr.bf16.mxu0 %v3668_v1 }
 0x1c7   :  { %946 = vmatmul.mubr.bf16.vlgmr.msra.gmra.mrb[16].mxu1 %v3943_v33  ;;  %v3298_v33 = vld [vmem:[#allocation11 + $0x24] ss:$16 sps:$4 sm:$0xff]  }
 0x1c8   :  { %955 = vmatprep.mubr.bf16.mxu1 %v3668_v1  ;;  %1753 = vmatpush1.bf16.msra.mxu1 %v3290_v58  ;;  %v3382_v58 = vld [vmem:[#allocation11 + $0x1e4] ss:$16 sps:$4 sm:$0xff]  }
 0x1c9   :  { %1754 = vmatprep.subr.bf16.mxu1 %v3298_v33 }
 0x1cc   :  { %1089 = vmatmul.mubr.bf16.gmra.mrb[28].mxu0 %v507_v57 }
 0x1cd   :  { %1098 = vmatprep.mubr.bf16.mxu0 %v3668_v1 }
 0x1cf   :  { %956 = vmatmul.mubr.bf16.gmra.mrb[20].mxu1 %v3954_v63  ;;  %v3301_v63 = vld [vmem:[#allocation11 + $0x2c] ss:$16 sps:$4 sm:$0xff]  }
 0x1d0   :  { %965 = vmatprep.mubr.bf16.mxu1 %v3668_v1  ;;  %1795 = vmatprep.subr.bf16.mxu0 %v3301_v63  ;;  %v4060_v63 = vrot.slane %v1139_v12, %v4054_v14 }
 0x1d4   :  { %1099 = vmatmul.mubr.bf16.gmra.mrb[32].mxu0 %v3949_v44 }
 0x1d5   :  { %1108 = vmatprep.mubr.bf16.mxu0 %v3668_v1 }
 0x1d7   :  { %966 = vmatmul.mubr.bf16.gmra.mrb[24].mxu1 %v3980_v10  ;;  %v3296_v10 = vld [vmem:[#allocation11 + $0x20] ss:$16 sps:$4 sm:$0xff]  }
 0x1d8   :  { %975 = vmatprep.mubr.bf16.mxu1 %v3668_v1  ;;  %1755 = vmatpush1.bf16.msra.mxu1 %v3296_v10  ;;  %v3380_v10 = vld [vmem:[#allocation11 + $0x1e0] ss:$16 sps:$4 sm:$0xff]  }
 0x1d9   :  { %1756 = vmatprep.subr.bf16.mxu1 %v3304_v15 }
 0x1dc   :  { %1109 = vmatmul.mubr.bf16.gmra.mrb[36].mxu0 %v3967_v39  ;;  %1757 = vmatpush1.bf16.msra.mxu1 %v3302_v17 }
 0x1dd   :  { %1118 = vmatprep.mubr.bf16.mxu0 %v3668_v1 }
 0x1df   :  { %976 = vmatmul.mubr.bf16.gmra.mrb[28].mxu1 %v507_v57  ;;  %v3358_v57 = vld [vmem:[#allocation11 + $0x164] ss:$16 sps:$4 sm:$0xff]  }
 0x1e0   :  { %985 = vmatprep.mubr.bf16.mxu1 %v3668_v1 }
 0x1e4   :  { %1119 = vmatmul.mubr.bf16.gmra.mrb[40].mxu0 %v3993_v28 }
 0x1e5   :  { %1128 = vmatprep.mubr.bf16.mxu0 %v3668_v1 }
 0x1e7   :  { %986 = vmatmul.mubr.bf16.gmra.mrb[32].mxu1 %v3949_v44  ;;  %v3299_v44 = vld [vmem:[#allocation11 + $0x28] ss:$16 sps:$4 sm:$0xff]  }
 0x1e8   :  { %995 = vmatprep.mubr.bf16.mxu1 %v3668_v1  ;;  %1796 = vmatpush1.bf16.msra.mxu0 %v3299_v44  ;;  %v3383_v44 = vld [vmem:[#allocation11 + $0x1e8] ss:$16 sps:$4 sm:$0xff]  }
 0x1e9   :  { %1797 = vmatprep.subr.bf16.mxu0 %v3307_v16 }
 0x1ec   :  { %1129 = vmatmul.mubr.bf16.gmra.mrb[44].mxu0 %v4019_v50 }
 0x1ed   :  { %1798 = vmatpush1.bf16.msra.mxu0 %v3305_v18 }
 0x1ee   :  { %1799 = vmatprep.subr.bf16.mxu0 %v3313_v19 }
 0x1ef   :  { %996 = vmatmul.mubr.bf16.gmra.mrb[36].mxu1 %v3967_v39  ;;  %v3310_v39 = vld [vmem:[#allocation11 + $0x64] ss:$16 sps:$4 sm:$0xff]  }
 0x1f0   :  { %1005 = vmatprep.mubr.bf16.mxu1 %v3668_v1  ;;  %1758 = vmatprep.subr.bf16.mxu1 %v3310_v39 }
 0x1f1   :  { %1800 = vmatpush1.bf16.msra.mxu0 %v3311_v21  ;;  %1759 = vmatpush1.bf16.msra.mxu1 %v3308_v20 }
 0x1f2   :  { %1760 = vmatprep.subr.bf16.mxu1 %v3316_v22  ;;  %1801 = vmatprep.subr.bf16.mxu0 %v3319_v23 }
 0x1f5   :  { %1802 = vmatpush1.bf16.msra.mxu0 %v3317_v25  ;;  %1761 = vmatpush1.bf16.msra.mxu1 %v3314_v24 }
 0x1f6   :  { %1803 = vmatprep.subr.bf16.mxu0 %v3325_v26 }
 0x1f7   :  { %1006 = vmatmul.mubr.bf16.gmra.mrb[40].mxu1 %v3993_v28  ;;  %v3328_v28 = vld [vmem:[#allocation11 + $0xc4] ss:$16 sps:$4 sm:$0xff]  }
 0x1f8   :  { %1015 = vmatprep.mubr.bf16.mxu1 %v3668_v1  ;;  %v3322_v1 = vld [vmem:[#allocation11 + $0xa4] ss:$16 sps:$4 sm:$0xff]  }
 0x1f9   :  { %1762 = vmatprep.subr.bf16.mxu1 %v3322_v1  ;;  %1804 = vmatpush1.bf16.msra.mxu0 %v3323_v45 }
 0x1fa   :  { %1763 = vmatpush1.bf16.msra.mxu1 %v3320_v27  ;;  %1805 = vmatprep.subr.bf16.mxu0 %v3331_v29 }
 0x1fb   :  { %1764 = vmatprep.subr.bf16.mxu1 %v3328_v28 }
 0x1fd   :  { %1806 = vmatpush1.bf16.msra.mxu0 %v3329_v49 }
 0x1fe   :  { %1765 = vmatpush1.bf16.msra.mxu1 %v3326_v30  ;;  %1807 = vmatprep.subr.bf16.mxu0 %v3337_v32 }
 0x1ff   :  { %1016 = vmatmul.mubr.bf16.gmra.mrb[44].mxu1 %v4019_v50  ;;  %1766 = vmatprep.subr.bf16.mxu1 %v3334_v31  ;;  %v3374_v50 = vld [vmem:[#allocation11 + $0x1c0] ss:$16 sps:$4 sm:$0xff]  }
 0x201   :  { %1808 = vmatpush1.bf16.msra.mxu0 %v3335_v35 }
 0x202   :  { %1767 = vmatpush1.bf16.msra.mxu1 %v3332_v34  ;;  %1809 = vmatprep.subr.bf16.mxu0 %v3343_v37 }
 0x203   :  { %1768 = vmatprep.subr.bf16.mxu1 %v3340_v36 }
 0x205   :  { %1810 = vmatpush1.bf16.msra.mxu0 %v3341_v40 }
 0x206   :  { %1769 = vmatpush1.bf16.msra.mxu1 %v3338_v38  ;;  %1811 = vmatprep.subr.bf16.mxu0 %v3349_v42 }
 0x207   :  { %1770 = vmatprep.subr.bf16.mxu1 %v3346_v41 }
 0x209   :  { %1812 = vmatpush1.bf16.msra.mxu0 %v3347_v46 }
 0x20a   :  { %1771 = vmatpush1.bf16.msra.mxu1 %v3344_v43  ;;  %1813 = vmatprep.subr.bf16.mxu0 %v3355_v53 }
 0x20b   :  { %1772 = vmatprep.subr.bf16.mxu1 %v3352_v48 }
 0x20d   :  { %1814 = vmatpush1.bf16.msra.mxu0 %v3353_v56 }
 0x20e   :  { %1773 = vmatpush1.bf16.msra.mxu1 %v3350_v55  ;;  %1815 = vmatprep.subr.bf16.mxu0 %v3361_v59 }
 0x20f   :  { %1774 = vmatprep.subr.bf16.mxu1 %v3358_v57 }
 0x211   :  { %1816 = vmatpush1.bf16.msra.mxu0 %v3359_v54 }
 0x212   :  { %1775 = vmatpush1.bf16.msra.mxu1 %v3356_v60  ;;  %1817 = vmatprep.subr.bf16.mxu0 %v3367_v0 }
 0x213   :  { %1776 = vmatprep.subr.bf16.mxu1 %v3364_v62 }
 0x215   :  { %1818 = vmatpush1.bf16.msra.mxu0 %v3365_v3 }
 0x216   :  { %1777 = vmatpush1.bf16.msra.mxu1 %v3362_v2  ;;  %1819 = vmatprep.subr.bf16.mxu0 %v3373_v7 }
 0x217   :  { %1778 = vmatprep.subr.bf16.mxu1 %v3370_v6 }
 0x219   :  { %1820 = vmatpush1.bf16.msra.mxu0 %v3371_v9 }
 0x21a   :  { %1779 = vmatpush1.bf16.msra.mxu1 %v3368_v8  ;;  %1821 = vmatprep.subr.bf16.mxu0 %v3379_v13 }
 0x21b   :  { %1780 = vmatprep.subr.bf16.mxu1 %v3376_v47 }
 0x21d   :  { %1822 = vmatpush1.bf16.msra.mxu0 %v3377_v51 }
 0x21e   :  { %1781 = vmatpush1.bf16.msra.mxu1 %v3374_v50  ;;  %1823 = vmatprep.subr.bf16.mxu0 %v3385_v4 }
 0x21f   :  { %1782 = vmatprep.subr.bf16.mxu1 %v3382_v58 }
 0x221   :  { %1824 = vmatpush1.bf16.msra.mxu0 %v3383_v44 }
 0x222   :  { %1783 = vmatpush1.bf16.msra.mxu1 %v3380_v10 }
 0x229   :  { %v834_v33 = vpop.f32.mrb[0].mxu0 }
 0x22a   :  { %v836_v15 = vpop.f32.mrb[1].mxu0  ;;  %v1151_v17 = vadd.f32 %v4057_v52, %v834_v33 }
 0x22b   :  { %v838_v16 = vpop.f32.mrb[2].mxu0  ;;  %v1152_v19 = vadd.f32 %v4060_v63, %v836_v15 }
 0x22c   :  { %v1153_v18 = vadd.f32 %v4057_v52, %v838_v16  ;;  %v840_v39 = vpop.f32.mrb[3].mxu0 }
 0x22d   :  { %v1154_v20 = vadd.f32 %v4060_v63, %v840_v39  ;;  %v874_v21 = vpop.f32.mrb[0].mxu1 }
 0x22e   :  { %v1183_v22 = vmax.f32 %v1151_v17, %v1153_v18  ;;  %v876_v23 = vpop.f32.mrb[1].mxu1  ;;  %v1167_v26 = vadd.f32 %v4057_v52, %v874_v21 }
 0x22f   :  { %v1190_v24 = vmax.f32 %v1152_v19, %v1154_v20  ;;  %v878_v25 = vpop.f32.mrb[2].mxu1  ;;  %v1168_v29 = vadd.f32 %v4060_v63, %v876_v23 }
 0x230   :  { %v1184_v1 = vrot.slane %v1183_v22, 4  ;;  %v1169_v27 = vadd.f32 %v4057_v52, %v878_v25  ;;  %v880_v45 = vpop.f32.mrb[3].mxu1 }
 0x231   :  { %v1191_v28 = vrot.slane %v1190_v24, 4  ;;  %v1170_v30 = vadd.f32 %v4060_v63, %v880_v45  ;;  %v3387_v45 = vld [vmem:[#allocation14 + $0xc0] sm:$0xff]  }
 0x232   :  { %v1185_v49 = vmax.f32 %v1183_v22, %v1184_v1  ;;  %v4070_v31 = vmax.f32 %v1167_v26, %v1169_v27  ;;  %v3386_v27 = vld [vmem:[#allocation14 + $0x40] sm:$0xff]   ;;  %3091 = vmatprep.subr.bf16.mxu0 %v3387_v45 }
 0x233   :  { %v1192_v32 = vmax.f32 %v1190_v24, %v1191_v28  ;;  %v4072_v34 = vmax.f32 %v1168_v29, %v1170_v30  ;;  %v844_v35 = vpop.f32.mrb[4].mxu0  ;;  %3027 = vmatprep.subr.bf16.mxu1 %v3386_v27 }
 0x234   :  { %v1186_v36 = vrot.slane %v1185_v49, 2  ;;  %v846_v37 = vpop.f32.mrb[5].mxu0  ;;  %v1155_v41 = vadd.f32 %v4057_v52, %v844_v35 }
 0x235   :  { %v1193_v38 = vrot.slane %v1192_v32, 2  ;;  %v848_v40 = vpop.f32.mrb[6].mxu0  ;;  %v1156_v46 = vadd.f32 %v4060_v63, %v846_v37 }
 0x236   :  { %v1157_v42 = vadd.f32 %v4057_v52, %v848_v40  ;;  %v850_v43 = vpop.f32.mrb[7].mxu0  ;;  %v1187_v53 = vmax.f32 %v1185_v49, %v1186_v36 }
 0x237   :  { %v1158_v48 = vadd.f32 %v4060_v63, %v850_v43  ;;  %v1194_v56 = vmax.f32 %v1192_v32, %v1193_v38 }
 0x238   :  { %v1197_v55 = vmax.f32 %v1155_v41, %v1157_v42  ;;  %v1188_v54 = vrot.slane %v1187_v53, 1 }
 0x239   :  { %v1204_v57 = vmax.f32 %v1156_v46, %v1158_v48  ;;  %v1195_v62 = vrot.slane %v1194_v56, 1 }
 0x23a   :  { %v1198_v59 = vrot.slane %v1197_v55, 4  ;;  %v1189_v6 = vmax.f32 %v1187_v53, %v1188_v54 }
 0x23b   :  { %v1205_v60 = vrot.slane %v1204_v57, 4  ;;  %v1196_v8 = vmax.f32 %v1194_v56, %v1195_v62 }
 0x23c   :  { %v1199_v61 = vmax.f32 %v1197_v55, %v1198_v59  ;;  %v1295_v13 = vpack.c.bf16 %v1189_v6, %v1189_v6 }
 0x23d   :  { %v1206_v0 = vmax.f32 %v1204_v57, %v1205_v60  ;;  %v1296_v51 = vpack.c.bf16 %v1196_v8, %v1196_v8 }
 0x23e   :  { %v1200_v2 = vrot.slane %v1199_v61, 2  ;;  %v1391_v15 = vunpack.c.l.b16 %v1295_v13 }
 0x23f   :  { %v1207_v3 = vrot.slane %v1206_v0, 2  ;;  %v1392_v18 = vunpack.c.l.b16 %v1296_v51 }
 0x240   :  { %v1201_v7 = vmax.f32 %v1199_v61, %v1200_v2 }
 0x241   :  { %v1208_v9 = vmax.f32 %v1206_v0, %v1207_v3 }
 0x242   :  { %v1202_v12 = vrot.slane %v1201_v7, 1 }
 0x243   :  { %v1209_v47 = vrot.slane %v1208_v9, 1 }
 0x244   :  { %v1203_v50 = vmax.f32 %v1201_v7, %v1202_v12 }
 0x245   :  { %v1210_v58 = vmax.f32 %v1208_v9, %v1209_v47 }
 0x246   :  { %v1297_v4 = vpack.c.bf16 %v1203_v50, %v1203_v50  ;;  %v884_v33 = vpop.f32.mrb[4].mxu1 }
 0x247   :  { %v1298_v10 = vpack.c.bf16 %v1210_v58, %v1210_v58  ;;  %v886_v44 = vpop.f32.mrb[5].mxu1  ;;  %v1171_v19 = vadd.f32 %v4057_v52, %v884_v33  ;;  %v1240_v33 = vrot.slane %v4070_v31, 4 }
 0x248   :  { %v1393_v16 = vunpack.c.l.b16 %v1297_v4  ;;  %v888_v17 = vpop.f32.mrb[6].mxu1  ;;  %v1172_v23 = vadd.f32 %v4060_v63, %v886_v44 }
 0x249   :  { %v1394_v39 = vunpack.c.l.b16 %v1298_v10  ;;  %v1173_v20 = vadd.f32 %v4057_v52, %v888_v17  ;;  %v890_v21 = vpop.f32.mrb[7].mxu1  ;;  %v1247_v10 = vrot.slane %v4072_v34, 4  ;;  %v1241_v17 = vmax.f32 %v4070_v31, %v1240_v33 }
 0x24a   :  { %v1408_v22 = vsel %vm1407_vm0, %v1393_v16, %v1391_v15  ;;  %v1174_v24 = vadd.f32 %v4060_v63, %v890_v21 }
 0x24b   :  { %v1421_v25 = vsel %vm1407_vm0, %v1394_v39, %v1392_v18  ;;  %v1253_v1 = vmax.f32 %v1171_v19, %v1173_v20  ;;  %v1248_v18 = vmax.f32 %v4072_v34, %v1247_v10 }
 0x24c   :  { %v1260_v26 = vmax.f32 %v1172_v23, %v1174_v24  ;;  %v1242_v23 = vrot.slane %v1241_v17, 2 }
 0x24d   :  { %v1254_v44 = vrot.slane %v1253_v1, 4  ;;  %v1249_v24 = vrot.slane %v1248_v18, 2 }
 0x24e   :  { %v1261_v15 = vrot.slane %v1260_v26, 4 }
 0x24f   :  { %v1255_v19 = vmax.f32 %v1253_v1, %v1254_v44 }
 0x250   :  { %v1262_v20 = vmax.f32 %v1260_v26, %v1261_v15  ;;  %v1243_v26 = vmax.f32 %v1241_v17, %v1242_v23 }
 0x251   :  { %v1256_v45 = vrot.slane %v1255_v19, 2 }
 0x259   :  { %v854_v28 = vpop.f32.mrb[8].mxu0 }
 0x25a   :  { %v856_v29 = vpop.f32.mrb[9].mxu0  ;;  %v1159_v49 = vadd.f32 %v4057_v52, %v854_v28 }
 0x25b   :  { %v858_v30 = vpop.f32.mrb[10].mxu0  ;;  %v1160_v36 = vadd.f32 %v4060_v63, %v856_v29  ;;  %v1263_v29 = vrot.slane %v1262_v20, 2 }
 0x25c   :  { %v1161_v32 = vadd.f32 %v4057_v52, %v858_v30  ;;  %v860_v35 = vpop.f32.mrb[11].mxu0 }
 0x25d   :  { %v1162_v37 = vadd.f32 %v4060_v63, %v860_v35  ;;  %v1250_v35 = vmax.f32 %v1248_v18, %v1249_v24 }
 0x25e   :  { %v1211_v38 = vmax.f32 %v1159_v49, %v1161_v32 }
 0x25f   :  { %v1218_v40 = vmax.f32 %v1160_v36, %v1162_v37 }
 0x260   :  { %v1212_v41 = vrot.slane %v1211_v38, 4 }
 0x261   :  { %v1219_v42 = vrot.slane %v1218_v40, 4 }
 0x262   :  { %v1213_v43 = vmax.f32 %v1211_v38, %v1212_v41  ;;  %v1257_v38 = vmax.f32 %v1255_v19, %v1256_v45  ;;  %v1264_v41 = vmax.f32 %v1262_v20, %v1263_v29 }
 0x263   :  { %v1220_v46 = vmax.f32 %v1218_v40, %v1219_v42 }
 0x264   :  { %v1214_v48 = vrot.slane %v1213_v43, 2 }
 0x265   :  { %v1221_v53 = vrot.slane %v1220_v46, 2 }
 0x266   :  { %v1215_v55 = vmax.f32 %v1213_v43, %v1214_v48 }
 0x267   :  { %v1222_v56 = vmax.f32 %v1220_v46, %v1221_v53  ;;  %v1244_v53 = vrot.slane %v1243_v26, 1 }
 0x268   :  { %v1216_v57 = vrot.slane %v1215_v55, 1 }
 0x269   :  { %v1223_v59 = vrot.slane %v1222_v56, 1 }
 0x26a   :  { %v1217_v60 = vmax.f32 %v1215_v55, %v1216_v57  ;;  %v1251_v55 = vrot.slane %v1250_v35, 1 }
 0x26b   :  { %v1224_v54 = vmax.f32 %v1222_v56, %v1223_v59 }
 0x26c   :  { %v1299_v61 = vpack.c.bf16 %v1217_v60, %v1217_v60  ;;  %v894_v62 = vpop.f32.mrb[8].mxu1  ;;  %v1258_v60 = vrot.slane %v1257_v38, 1 }
 0x26d   :  { %v1300_v0 = vpack.c.bf16 %v1224_v54, %v1224_v54  ;;  %v896_v2 = vpop.f32.mrb[9].mxu1  ;;  %v1175_v8 = vadd.f32 %v4057_v52, %v894_v62  ;;  %v1265_v62 = vrot.slane %v1264_v41, 1 }
 0x26e   :  { %v1395_v3 = vunpack.c.l.b16 %v1299_v61  ;;  %v898_v6 = vpop.f32.mrb[10].mxu1  ;;  %v1176_v13 = vadd.f32 %v4060_v63, %v896_v2 }
 0x26f   :  { %v1396_v7 = vunpack.c.l.b16 %v1300_v0  ;;  %v1177_v9 = vadd.f32 %v4057_v52, %v898_v6  ;;  %v900_v12 = vpop.f32.mrb[11].mxu1 }
 0x270   :  { %v4091_v47 = vsel %vm1409_vm1, %v1395_v3, %v1408_v22  ;;  %v1178_v50 = vadd.f32 %v4060_v63, %v900_v12 }
 0x271   :  { %v4096_v51 = vsel %vm1409_vm1, %v1396_v7, %v1421_v25  ;;  %v1267_v58 = vmax.f32 %v1175_v8, %v1177_v9  ;;  %v1245_v7 = vmax.f32 %v1243_v26, %v1244_v53  ;;  %v1252_v8 = vmax.f32 %v1250_v35, %v1251_v55 }
 0x272   :  { %v1274_v4 = vmax.f32 %v1176_v13, %v1178_v50  ;;  %v1259_v13 = vmax.f32 %v1257_v38, %v1258_v60 }
 0x273   :  { %v1268_v16 = vrot.slane %v1267_v58, 4  ;;  %v1303_v15 = vpack.c.bf16 %v1245_v7, %v1245_v7 }
 0x274   :  { %v1275_v39 = vrot.slane %v1274_v4, 4  ;;  %v1305_v19 = vpack.c.bf16 %v1259_v13, %v1259_v13 }
 0x275   :  { %v1269_v21 = vmax.f32 %v1267_v58, %v1268_v16  ;;  %v1266_v58 = vmax.f32 %v1264_v41, %v1265_v62  ;;  %v1304_v16 = vpack.c.bf16 %v1252_v8, %v1252_v8  ;;  %v1399_v29 = vunpack.c.l.b16 %v1303_v15 }
 0x276   :  { %v1276_v25 = vmax.f32 %v1274_v4, %v1275_v39 }
 0x277   :  { %v1270_v31 = vrot.slane %v1269_v21, 2 }
 0x278   :  { %v1277_v36 = vrot.slane %v1276_v25, 2 }
 0x279   :  { %v1271_v43 = vmax.f32 %v1269_v21, %v1270_v31 }
 0x27a   :  { %v1278_v56 = vmax.f32 %v1276_v25, %v1277_v36 }
 0x27b   :  { %v1272_v3 = vrot.slane %v1271_v43, 1 }
 0x27c   :  { %v1279_v9 = vrot.slane %v1278_v56, 1 }
 0x27d   :  { %v1273_v33 = vmax.f32 %v1271_v43, %v1272_v3 }
 0x27e   :  { %v1280_v17 = vmax.f32 %v1278_v56, %v1279_v9 }
 0x27f   :  { %v864_v22 = vpop.f32.mrb[12].mxu0 }
 0x280   :  { %v866_v27 = vpop.f32.mrb[13].mxu0  ;;  %v1163_v30 = vadd.f32 %v4057_v52, %v864_v22  ;;  %v1306_v22 = vpack.c.bf16 %v1266_v58, %v1266_v58 }
 0x281   :  { %v868_v28 = vpop.f32.mrb[14].mxu0  ;;  %v1164_v34 = vadd.f32 %v4060_v63, %v866_v27  ;;  %v1307_v27 = vpack.c.bf16 %v1273_v33, %v1273_v33 }
 0x282   :  { %v1165_v49 = vadd.f32 %v4057_v52, %v868_v28  ;;  %v870_v32 = vpop.f32.mrb[15].mxu0 }
 0x283   :  { %v1166_v1 = vadd.f32 %v4060_v63, %v870_v32 }
 0x284   :  { %v1225_v37 = vmax.f32 %v1163_v30, %v1165_v49  ;;  %v1400_v30 = vunpack.c.l.b16 %v1304_v16  ;;  %v1308_v49 = vpack.c.bf16 %v1280_v17, %v1280_v17 }
 0x285   :  { %v1232_v40 = vmax.f32 %v1164_v34, %v1166_v1  ;;  %v1401_v34 = vunpack.c.l.b16 %v1305_v19 }
 0x286   :  { %v1226_v42 = vrot.slane %v1225_v37, 4  ;;  %v1404_v56 = vunpack.c.l.b16 %v1308_v49 }
 0x287   :  { %v1233_v46 = vrot.slane %v1232_v40, 4  ;;  %v4106_v48 = vpop.f32.mrb[16].mxu0 }
 0x288   :  { %v1227_v57 = vmax.f32 %v1225_v37, %v1226_v42  ;;  %v4108_v59 = vpop.f32.mrb[17].mxu0  ;;  %v1402_v37 = vunpack.c.l.b16 %v1306_v22  ;;  %v1403_v42 = vunpack.c.l.b16 %v1307_v27 }
 0x289   :  { %v1234_v54 = vmax.f32 %v1232_v40, %v1233_v46  ;;  %v4110_v61 = vpop.f32.mrb[18].mxu0 }
 0x28a   :  { %v1228_v0 = vrot.slane %v1227_v57, 2  ;;  %v4112_v2 = vpop.f32.mrb[19].mxu0 }
 0x28b   :  { %v1235_v6 = vrot.slane %v1234_v54, 2 }
 0x28c   :  { %v1229_v12 = vmax.f32 %v1227_v57, %v1228_v0 }
 0x28d   :  { %v1236_v50 = vmax.f32 %v1234_v54, %v1235_v6 }
 0x28e   :  { %v1230_v4 = vrot.slane %v1229_v12, 1 }
 0x28f   :  { %v1237_v10 = vrot.slane %v1236_v50, 1  ;;  %v4114_v44 = vpop.f32.mrb[20].mxu0 }
 0x290   :  { %v1231_v18 = vmax.f32 %v1229_v12, %v1230_v4  ;;  %v4116_v39 = vpop.f32.mrb[21].mxu0 }
 0x291   :  { %v1238_v20 = vmax.f32 %v1236_v50, %v1237_v10  ;;  %v4118_v21 = vpop.f32.mrb[22].mxu0 }
 0x292   :  { %v1301_v23 = vpack.c.bf16 %v1231_v18, %v1231_v18  ;;  %v904_v24 = vpop.f32.mrb[12].mxu1  ;;  %v4120_v25 = vpop.f32.mrb[23].mxu0 }
 0x293   :  { %v1302_v45 = vpack.c.bf16 %v1238_v20, %v1238_v20  ;;  %v906_v28 = vpop.f32.mrb[13].mxu1  ;;  %v1179_v26 = vadd.f32 %v4057_v52, %v904_v24 }
 0x294   :  { %v1397_v32 = vunpack.c.l.b16 %v1301_v23  ;;  %v908_v31 = vpop.f32.mrb[14].mxu1  ;;  %v1180_v40 = vadd.f32 %v4060_v63, %v906_v28 }
 0x295   :  { %v1398_v1 = vunpack.c.l.b16 %v1302_v45  ;;  %v1181_v35 = vadd.f32 %v4057_v52, %v908_v31  ;;  %v910_v36 = vpop.f32.mrb[15].mxu1 }
 0x296   :  { %v1412_v38 = vsel %vm1411_vm2, %v1397_v32, %v4091_v47  ;;  %v1182_v41 = vadd.f32 %v4060_v63, %v910_v36 }
 0x297   :  { %v1281_v43 = vmax.f32 %v1179_v26, %v1181_v35  ;;  %v4128_v46 = vpop.f32.mrb[24].mxu0  ;;  %v1414_v53 = vsel %vm1413_vm3, %v1399_v29, %v1412_v38  ;;  %v1423_v55 = vsel %vm1411_vm2, %v1398_v1, %v4096_v51 }
 0x298   :  { %v1288_v52 = vmax.f32 %v1180_v40, %v1182_v41  ;;  %v4133_v57 = vpop.f32.mrb[25].mxu0  ;;  %v1416_v60 = vsel %vm1415_vm4, %v1401_v34, %v1414_v53  ;;  %v1424_v47 = vsel %vm1413_vm3, %v1400_v30, %v1423_v55  ;;  %v3388_v41 = vld [vmem:[#allocation14] sm:$0xff]   ;;  %v3390_v55 = vld [vmem:[#allocation14 + $0x48] sm:$0xff]  }
 0x299   :  { %v1282_v54 = vrot.slane %v1281_v43, 4  ;;  %v4137_v62 = vpop.f32.mrb[26].mxu0  ;;  %v1418_v63 = vsel %vm1417_vm5, %v1403_v42, %v1416_v60  ;;  %v1425_v0 = vsel %vm1415_vm4, %v1402_v37, %v1424_v47  ;;  %v3389_v42 = vld [vmem:[#allocation14 + $0x80] sm:$0xff]   ;;  %v3392_v47 = vld [vmem:[#allocation14 + $0x8] sm:$0xff]  }
 0x29a   :  { %v1289_v3 = vrot.slane %v1288_v52, 4  ;;  %v4141_v6 = vpop.f32.mrb[16].mxu1  ;;  %v4143_v7 = vpop.f32.mrb[27].mxu0  ;;  %v1426_v51 = vsel %vm1417_vm5, %v1404_v56, %v1425_v0  ;;  %v3391_v56 = vld [vmem:[#allocation14 + $0xc8] sm:$0xff]   ;;  %v3394_v0 = vld [vmem:[#allocation14 + $0x50] sm:$0xff]  }
 0x29b   :  { %v1283_v8 = vmax.f32 %v1281_v43, %v1282_v54  ;;  %v4146_v9 = vpop.f32.mrb[17].mxu1  ;;  %v3393_v54 = vld [vmem:[#allocation14 + $0x88] sm:$0xff]  }
 0x29c   :  { %v1290_v12 = vmax.f32 %v1288_v52, %v1289_v3  ;;  %v4148_v13 = vpop.f32.mrb[18].mxu1  ;;  %v3395_v3 = vld [vmem:[#allocation14 + $0xd0] sm:$0xff]  }
 0x29d   :  { %v1284_v50 = vrot.slane %v1283_v8, 2  ;;  %v4150_v58 = vpop.f32.mrb[19].mxu1 }
 0x29e   :  { %v1291_v4 = vrot.slane %v1290_v12, 2 }
 0x29f   :  { %v1285_v33 = vmax.f32 %v1283_v8, %v1284_v50  ;;  %v4152_v10 = vpop.f32.mrb[28].mxu0 }
 0x2a0   :  { %v1292_v15 = vmax.f32 %v1290_v12, %v1291_v4  ;;  %v4154_v16 = vpop.f32.mrb[29].mxu0  ;;  %v3396_v4 = vld [vmem:[#allocation14 + $0x10] sm:$0xff]  }
 0x2a1   :  { %v1286_v17 = vrot.slane %v1285_v33, 1  ;;  %v4156_v18 = vpop.f32.mrb[30].mxu0 }
 0x2a2   :  { %v1293_v19 = vrot.slane %v1292_v15, 1  ;;  %v4158_v20 = vpop.f32.mrb[20].mxu1  ;;  %v4160_v22 = vpop.f32.mrb[31].mxu0 }
 0x2a3   :  { %v1287_v23 = vmax.f32 %v1285_v33, %v1286_v17  ;;  %v4162_v24 = vpop.f32.mrb[21].mxu1  ;;  %v3397_v33 = vld [vmem:[#allocation14 + $0x90] sm:$0xff]  }
 0x2a4   :  { %v1294_v27 = vmax.f32 %v1292_v15, %v1293_v19  ;;  %v4164_v45 = vpop.f32.mrb[22].mxu1 }
 0x2a5   :  { %v1309_v28 = vpack.c.bf16 %v1287_v23, %v1287_v23  ;;  %v4166_v29 = vpop.f32.mrb[23].mxu1 }
 0x2a6   :  { %v1310_v30 = vpack.c.bf16 %v1294_v27, %v1294_v27 }
 0x2a7   :  { %v1405_v49 = vunpack.c.l.b16 %v1309_v28  ;;  %v4168_v32 = vpop.f32.mrb[32].mxu0 }
 0x2a8   :  { %4526 = vst [vmem:[#allocation24_spill] sm:$0xff] %v4168_v32  ;;  %v4170_v31 = vpop.f32.mrb[33].mxu0  ;;  %v1406_v34 = vunpack.c.l.b16 %v1310_v30 }
 0x2a9   :  { %4527 = vst [vmem:[#allocation25_spill] sm:$0xff] %v4170_v31  ;;  %v4172_v1 = vpop.f32.mrb[34].mxu0  ;;  %v1420_v26 = vsel %vm1419_vm6, %v1405_v49, %v1418_v63 }
 0x2aa   :  { %4528 = vst [vmem:[#allocation26_spill] sm:$0xff] %v4172_v1  ;;  %v4175_v35 = vpop.f32.mrb[24].mxu1  ;;  %v4177_v36 = vpop.f32.mrb[35].mxu0  ;;  %v1427_v37 = vsel %vm1419_vm6, %v1406_v34, %v1426_v51  ;;  %v1428_v53 = vpack.c.b16 %v1420_v26, %v1420_v26 }
 0x2ab   :  { %4529 = vst [vmem:[#allocation27_spill] sm:$0xff] %v4177_v36  ;;  %v4180_v38 = vpop.f32.mrb[25].mxu1  ;;  %v1429_v40 = vpack.c.b16 %v1427_v37, %v1427_v37 }
 0x2ac   :  { %v4182_v43 = vpop.f32.mrb[26].mxu1 }
 0x2ad   :  { %v4184_v52 = vpop.f32.mrb[27].mxu1  ;;  %1784 = vmatprep.mubr.bf16.mxu1 %v1429_v40  ;;  %1825 = vmatprep.mubr.bf16.mxu0 %v1429_v40 }
 0x2ae   :  { %1785 = vmatmul.mubr.bf16.vlgmr.msra.gmra.mrb[48].mxu1 %v1428_v53  ;;  %1826 = vmatmul.mubr.bf16.vlgmr.msra.gmra.mrb[48].mxu0 %v1428_v53 }
 0x2af   :  { %v4186_v60 = vpop.f32.mrb[36].mxu0  ;;  %3028 = vmatpush3.bf16.msra.mxu1 %v3388_v41  ;;  %3092 = vmatpush3.bf16.msra.mxu0 %v3389_v42 }
 0x2b0   :  { %4530 = vst [vmem:[#allocation28_spill] sm:$0xff] %v4186_v60  ;;  %v4188_v63 = vpop.f32.mrb[37].mxu0  ;;  %3029 = vmatprep.subr.bf16.mxu1 %v3390_v55  ;;  %3093 = vmatprep.subr.bf16.mxu0 %v3391_v56 }
 0x2b1   :  { %4531 = vst [vmem:[#allocation29_spill] sm:$0xff] %v4188_v63  ;;  %v4190_v51 = vpop.f32.mrb[38].mxu0 }
 0x2b2   :  { %4532 = vst [vmem:[#allocation30_spill] sm:$0xff] %v4190_v51  ;;  %v4192_v8 = vpop.f32.mrb[28].mxu1  ;;  %v4194_v12 = vpop.f32.mrb[39].mxu0  ;;  %v3411_v51 = vld [vmem:[#allocation14 + $0xf0] sm:$0xff]  }
 0x2b3   :  { %4533 = vst [vmem:[#allocation31_spill] sm:$0xff] %v4194_v12  ;;  %v4196_v50 = vpop.f32.mrb[29].mxu1  ;;  %3030 = vmatpush3.bf16.msra.mxu1 %v3392_v47  ;;  %3094 = vmatpush3.bf16.msra.mxu0 %v3393_v54 }
 0x2b4   :  { %v4198_v15 = vpop.f32.mrb[30].mxu1  ;;  %3031 = vmatprep.subr.bf16.mxu1 %v3394_v0  ;;  %3095 = vmatprep.subr.bf16.mxu0 %v3395_v3 }
 0x2b5   :  { %v4200_v17 = vpop.f32.mrb[31].mxu1 }
 0x2b7   :  { %v4202_v19 = vpop.f32.mrb[40].mxu0  ;;  %3032 = vmatpush3.bf16.msra.mxu1 %v3396_v4  ;;  %3096 = vmatpush3.bf16.msra.mxu0 %v3397_v33 }
 0x2b8   :  { %4534 = vst [vmem:[#allocation32_spill] sm:$0xff] %v4202_v19  ;;  %v4204_v23 = vpop.f32.mrb[41].mxu0  ;;  %v3400_v19 = vld [vmem:[#allocation14 + $0x18] sm:$0xff]  }
 0x2b9   :  { %4535 = vst [vmem:[#allocation33_spill] sm:$0xff] %v4204_v23  ;;  %v4206_v27 = vpop.f32.mrb[42].mxu0  ;;  %v3404_v23 = vld [vmem:[#allocation14 + $0x20] sm:$0xff]  }
 0x2ba   :  { %4536 = vst [vmem:[#allocation34_spill] sm:$0xff] %v4206_v27  ;;  %v4208_v28 = vpop.f32.mrb[32].mxu1  ;;  %v4210_v30 = vpop.f32.mrb[43].mxu0  ;;  %v3399_v27 = vld [vmem:[#allocation14 + $0xd8] sm:$0xff]  }
 0x2bb   :  { %4537 = vst [vmem:[#allocation35_spill] sm:$0xff] %v4208_v28  ;;  %4538 = vst [vmem:[#allocation36_spill] sm:$0xff] %v4210_v30  ;;  %v4212_v49 = vpop.f32.mrb[33].mxu1  ;;  %v3401_v30 = vld [vmem:[#allocation14 + $0x98] sm:$0xff]   ;;  %3097 = vmatprep.subr.bf16.mxu0 %v3399_v27  ;;  %v3413_v27 = vld [vmem:[#allocation14 + $0xb0] sm:$0xff]  }
 0x2bc   :  { %v4214_v34 = vpop.f32.mrb[34].mxu1  ;;  %3098 = vmatpush3.bf16.msra.mxu0 %v3401_v30  ;;  %v3414_v30 = vld [vmem:[#allocation14 + $0x78] sm:$0xff]  }
 0x2bd   :  { %4539 = vst [vmem:[#allocation37_spill] sm:$0xff] %v4214_v34  ;;  %v4216_v26 = vpop.f32.mrb[35].mxu1 }
 0x2be   :  { %4540 = vst [vmem:[#allocation38_spill] sm:$0xff] %v4216_v26 }
 0x2bf   :  { %v4218_v37 = vpop.f32.mrb[44].mxu0 }
 0x2c0   :  { %4541 = vst [vmem:[#allocation39_spill] sm:$0xff] %v4218_v37  ;;  %v4220_v40 = vpop.f32.mrb[45].mxu0 }
 0x2c1   :  { %4542 = vst [vmem:[#allocation40_spill] sm:$0xff] %v4220_v40  ;;  %v4222_v41 = vpop.f32.mrb[46].mxu0  ;;  %v3398_v40 = vld [vmem:[#allocation14 + $0x58] sm:$0xff]  }
 0x2c2   :  { %4543 = vst [vmem:[#allocation41_spill] sm:$0xff] %v4222_v41  ;;  %v4224_v42 = vpop.f32.mrb[36].mxu1  ;;  %v4226_v53 = vpop.f32.mrb[47].mxu0  ;;  %3033 = vmatprep.subr.bf16.mxu1 %v3398_v40  ;;  %v3415_v40 = vld [vmem:[#allocation14 + $0xf8] sm:$0xff]  }
 0x2c3   :  { %4544 = vst [vmem:[#allocation42_spill] sm:$0xff] %v4224_v42  ;;  %4545 = vst [vmem:[#allocation43_spill] sm:$0xff] %v4226_v53  ;;  %v4228_v55 = vpop.f32.mrb[37].mxu1  ;;  %3034 = vmatpush3.bf16.msra.mxu1 %v3400_v19  ;;  %v3412_v19 = vld [vmem:[#allocation14 + $0x30] sm:$0xff]  }
 0x2c4   :  { %4546 = vst [vmem:[#allocation44_spill] sm:$0xff] %v4228_v55  ;;  %v4230_v56 = vpop.f32.mrb[38].mxu1 }
 0x2c5   :  { %4547 = vst [vmem:[#allocation45_spill] sm:$0xff] %v4230_v56  ;;  %v4232_v47 = vpop.f32.mrb[39].mxu1 }
 0x2c6   :  { %4548 = vst [vmem:[#allocation46_spill] sm:$0xff] %v4232_v47 }
 0x2ca   :  { %v4234_v54 = vpop.f32.mrb[40].mxu1 }
 0x2cb   :  { %4549 = vst [vmem:[#allocation47_spill] sm:$0xff] %v4234_v54  ;;  %v4236_v0 = vpop.f32.mrb[41].mxu1  ;;  %v3402_v54 = vld [vmem:[#allocation14 + $0x60] sm:$0xff]  }
 0x2cc   :  { %4550 = vst [vmem:[#allocation48_spill] sm:$0xff] %v4236_v0  ;;  %v4238_v3 = vpop.f32.mrb[42].mxu1  ;;  %3035 = vmatprep.subr.bf16.mxu1 %v3402_v54  ;;  %v3410_v0 = vld [vmem:[#allocation14 + $0x70] sm:$0xff]   ;;  %v3417_v54 = vld [vmem:[#allocation14 + $0xb8] sm:$0xff]  }
 0x2cd   :  { %4551 = vst [vmem:[#allocation49_spill] sm:$0xff] %v4238_v3  ;;  %v4240_v4 = vpop.f32.mrb[43].mxu1  ;;  %v3403_v3 = vld [vmem:[#allocation14 + $0xe0] sm:$0xff]   ;;  %3036 = vmatpush3.bf16.msra.mxu1 %v3404_v23  ;;  %v3416_v23 = vld [vmem:[#allocation14 + $0x38] sm:$0xff]  }
 0x2ce   :  { %4552 = vst [vmem:[#allocation50_spill] sm:$0xff] %v4240_v4  ;;  %v3405_v4 = vld [vmem:[#allocation14 + $0xa0] sm:$0xff]   ;;  %3099 = vmatprep.subr.bf16.mxu0 %v3403_v3  ;;  %v3670_v3 = vmov 1966171168  }
 0x2cf   :  { %3100 = vmatpush3.bf16.msra.mxu0 %v3405_v4  ;;  %v1843_v4 = vunpack.c.l.s4 %v3670_v3  ;;  %v2130_v3 = vld [vmem:[#allocation13] sm:$0xf] }
 0x2d2   :  { %v4242_v33 = vpop.f32.mrb[44].mxu1 }
 0x2d3   :  { %4553 = vst [vmem:[#allocation51_spill] sm:$0xff] %v4242_v33  ;;  %v4244_v41 = vpop.f32.mrb[45].mxu1  ;;  %v3406_v33 = vld [vmem:[#allocation14 + $0x68] sm:$0xff]  }
 0x2d4   :  { %4554 = vst [vmem:[#allocation52_spill] sm:$0xff] %v4244_v41  ;;  %v4246_v37 = vpop.f32.mrb[46].mxu1  ;;  %v3408_v41 = vld [vmem:[#allocation14 + $0x28] sm:$0xff]   ;;  %3037 = vmatprep.subr.bf16.mxu1 %v3406_v33 }
 0x2d5   :  { %4555 = vst [vmem:[#allocation53_spill] sm:$0xff] %v4246_v37  ;;  %v4248_v53 = vpop.f32.mrb[47].mxu1  ;;  %v3407_v37 = vld [vmem:[#allocation14 + $0xe8] sm:$0xff]   ;;  %3038 = vmatpush3.bf16.msra.mxu1 %v3408_v41 }
 0x2d6   :  { %4556 = vst [vmem:[#allocation54_spill] sm:$0xff] %v4248_v53  ;;  %v3409_v53 = vld [vmem:[#allocation14 + $0xa8] sm:$0xff]   ;;  %3101 = vmatprep.subr.bf16.mxu0 %v3407_v37  ;;  %3039 = vmatprep.subr.bf16.mxu1 %v3410_v0  ;;  %v1844_v37 = vunpack.c.0.s8 %v1843_v4  ;;  %v4252_v4 = vsub.s32 3, %v4048_v5 }
 0x2d7   :  { %3102 = vmatpush3.bf16.msra.mxu0 %v3409_v53 }
 0x2d8   :  { %3103 = vmatprep.subr.bf16.mxu0 %v3411_v51  ;;  %v1847_v53 = vsub.s32 %v1844_v37, %v4048_v5  ;;  %v4255_v37 = vsub.s32 2, %v4048_v5  ;;  %v4272_v5 = vrot.slane %v2130_v3, %v4051_v11 }
 0x2d9   :  { %3040 = vmatpush3.bf16.msra.mxu1 %v3412_v19 }
 0x2da   :  { %3041 = vmatprep.subr.bf16.mxu1 %v3414_v30 }
 0x2db   :  { %3104 = vmatpush3.bf16.msra.mxu0 %v3413_v27 }
 0x2dc   :  { %3105 = vmatprep.subr.bf16.mxu0 %v3415_v40 }
 0x2dd   :  { %3042 = vmatpush3.bf16.msra.mxu1 %v3416_v23 }
 0x2df   :  { %3106 = vmatpush3.bf16.msra.mxu0 %v3417_v54 }
 0x381   :  { %v1786_v33 = vpop.f32.mrb[48].mxu1  ;;  %v1827_v41 = vpop.f32.mrb[48].mxu0 }
 0x382   :  { %v1788_v60 = vpop.f32.mrb[49].mxu1  ;;  %v1829_v0 = vpop.f32.mrb[49].mxu0 }
 0x383   :  { %v1838_v51 = vcombine.low %v1786_v33, %v1788_v60  ;;  %v1839_v56 = vcombine.high %v1786_v33, %v1788_v60  ;;  %v1840_v42 = vcombine.low %v1827_v41, %v1829_v0  ;;  %v1841_v19 = vcombine.high %v1827_v41, %v1829_v0  ;;  %v1790_v27 = vpop.f32.mrb[50].mxu1  ;;  %v1831_v12 = vpop.f32.mrb[50].mxu0 }
 0x384   :  { %v1791_v63 = vpop.f32.mrb[51].mxu1  ;;  %v1832_v30 = vpop.f32.mrb[51].mxu0 }
 0x385   :  { %v1848_v40 = vrot.slane %v1838_v51, %v1847_v53  ;;  %v1855_v23 = vrot.slane %v1839_v56, %v1847_v53  ;;  %v1862_v54 = vrot.slane %v1840_v42, %v1847_v53  ;;  %v1869_v47 = vrot.slane %v1841_v19, %v1847_v53 }
 0x386   :  { %v4262_v63 = vrot.slane %v2130_v3, %v4054_v14  ;;  %v4265_v42 = vrot.slane %v2130_v3, %v4252_v4  ;;  %v4275_v51 = vrot.slane %v2130_v3, %v4255_v37 }
 0x387   :  { %v1870_v55 = vcombine.low %v1848_v40, %v1862_v54  ;;  %v1871_v1 = vcombine.high %v1848_v40, %v1862_v54  ;;  %v1872_v60 = vcombine.low %v1855_v23, %v1869_v47  ;;  %v1873_v33 = vcombine.high %v1855_v23, %v1869_v47 }
 0x389   :  { %v4257_v41 = vrot.slane %v1870_v55, %v1847_v53  ;;  %v4259_v12 = vrot.slane %v1871_v1, %v1847_v53  ;;  %v4267_v56 = vrot.slane %v1872_v60, %v1847_v53  ;;  %v4269_v0 = vrot.slane %v1873_v33, %v1847_v53 }
 0x38b   :  { %4557 = vst [vmem:[#allocation55_spill] sm:$0xff] %v4269_v0  ;;  %v1913_v1 = vrot.slane %v4257_v41, %v4054_v14  ;;  %v1921_v55 = vrot.slane %v4257_v41, %v4252_v4  ;;  %v1909_v47 = vrot.slane %v4257_v41, %v4051_v11  ;;  %v1917_v19 = vrot.slane %v4257_v41, %v4255_v37 }
 0x38c   :  { %v1929_v53 = vrot.slane %v4259_v12, %v4054_v14  ;;  %v1937_v27 = vrot.slane %v4259_v12, %v4252_v4  ;;  %v1925_v30 = vrot.slane %v4259_v12, %v4051_v11  ;;  %v1933_v40 = vrot.slane %v4259_v12, %v4255_v37 }
 0x38d   :  { %v2067_v23 = vadd.f32 %v1913_v1, %v4146_v9  ;;  %v2071_v54 = vadd.f32 %v1913_v1, %v4150_v58  ;;  %v2069_v3 = vadd.f32 %v1921_v55, %v4108_v59  ;;  %v2073_v60 = vadd.f32 %v1921_v55, %v4112_v2 }
 0x38e   :  { %v2066_v33 = vadd.f32 %v1909_v47, %v4141_v6  ;;  %v2070_v0 = vadd.f32 %v1909_v47, %v4148_v13  ;;  %v2068_v32 = vadd.f32 %v1917_v19, %v4106_v48  ;;  %v2072_v34 = vadd.f32 %v1917_v19, %v4110_v61 }
 0x38f   :  { %v2153_v28 = vadd.f32 %v4262_v63, %v2067_v23  ;;  %v2157_v36 = vadd.f32 %v4262_v63, %v2071_v54  ;;  %v2155_v9 = vadd.f32 %v4265_v42, %v2069_v3  ;;  %v2159_v58 = vadd.f32 %v4265_v42, %v2073_v60 }
 0x390   :  { %v2152_v59 = vadd.f32 %v4272_v5, %v2066_v33  ;;  %v2156_v2 = vadd.f32 %v4272_v5, %v2070_v0  ;;  %v2154_v6 = vadd.f32 %v4275_v51, %v2068_v32  ;;  %v2158_v13 = vadd.f32 %v4275_v51, %v2072_v34 }
 0x391   :  { %v2217_v1 = vmax.f32 %v2153_v28, 0.0  ;;  %v2221_v48 = vmax.f32 %v2157_v36, 0.0  ;;  %v2219_v55 = vmax.f32 %v2155_v9, 0.0  ;;  %v2223_v61 = vmax.f32 %v2159_v58, 0.0 }
 0x392   :  { %v2216_v47 = vmax.f32 %v2152_v59, 0.0  ;;  %v2220_v19 = vmax.f32 %v2156_v2, 0.0  ;;  %v2218_v23 = vmax.f32 %v2154_v6, 0.0  ;;  %v2222_v54 = vmax.f32 %v2158_v13, 0.0 }
 0x393   :  { %v2281_v31 = vpack.c.bf16 %v2221_v48, %v2217_v1  ;;  %v2283_v3 = vpack.c.bf16 %v2223_v61, %v2219_v55  ;;  %v2075_v60 = vadd.f32 %v1929_v53, %v4162_v24  ;;  %v2079_v33 = vadd.f32 %v1929_v53, %v4166_v29 }
 0x394   :  { %v2280_v26 = vpack.c.bf16 %v2220_v19, %v2216_v47  ;;  %v2282_v0 = vpack.c.bf16 %v2222_v54, %v2218_v23  ;;  %v2077_v32 = vadd.f32 %v1937_v27, %v4116_v39  ;;  %v2081_v34 = vadd.f32 %v1937_v27, %v4120_v25 }
 0x395   :  { %2607 = vmatprep.mubr.bf16.mxu1 %v2281_v31  ;;  %2704 = vmatprep.mubr.bf16.mxu0 %v2283_v3  ;;  %v2161_v36 = vadd.f32 %v4262_v63, %v2075_v60  ;;  %v2165_v28 = vadd.f32 %v4262_v63, %v2079_v33  ;;  %v2074_v9 = vadd.f32 %v1925_v30, %v4158_v20 }
 0x396   :  { %2608 = vmatmul.mubr.bf16.vlgmr.msra.gmra.mrb[52].mxu1 %v2280_v26  ;;  %2705 = vmatmul.mubr.bf16.vlgmr.msra.gmra.mrb[52].mxu0 %v2282_v0  ;;  %v2163_v24 = vadd.f32 %v4265_v42, %v2077_v32  ;;  %v2167_v29 = vadd.f32 %v4265_v42, %v2081_v34  ;;  %v2078_v53 = vadd.f32 %v1925_v30, %v4164_v45 }
 0x397   :  { %v2225_v58 = vmax.f32 %v2161_v36, 0.0  ;;  %v2229_v39 = vmax.f32 %v2165_v28, 0.0  ;;  %v2160_v25 = vadd.f32 %v4272_v5, %v2074_v9  ;;  %v2076_v31 = vadd.f32 %v1933_v40, %v4114_v44 }
 0x398   :  { %v2227_v27 = vmax.f32 %v2163_v24, 0.0  ;;  %v2231_v59 = vmax.f32 %v2167_v29, 0.0  ;;  %v2164_v2 = vadd.f32 %v4272_v5, %v2078_v53  ;;  %v2080_v20 = vadd.f32 %v1933_v40, %v4118_v21 }
 0x399   :  { %v2285_v26 = vpack.c.bf16 %v2229_v39, %v2225_v58  ;;  %v2224_v6 = vmax.f32 %v2160_v25, 0.0  ;;  %v2162_v13 = vadd.f32 %v4275_v51, %v2076_v31  ;;  %v1902_v1 = vcombine.high %v4257_v41, %v4257_v41 }
 0x39a   :  { %v2287_v45 = vpack.c.bf16 %v2231_v59, %v2227_v27  ;;  %v2228_v30 = vmax.f32 %v2164_v2, 0.0  ;;  %v2166_v48 = vadd.f32 %v4275_v51, %v2080_v20  ;;  %v1904_v44 = vcombine.high %v4259_v12, %v4259_v12 }
 0x39b   :  { %2615 = vmatprep.mubr.bf16.mxu1 %v2285_v26  ;;  %v2226_v55 = vmax.f32 %v2162_v13, 0.0  ;;  %v1945_v61 = vrot.slane %v1902_v1, %v4054_v14  ;;  %v1953_v21 = vrot.slane %v1902_v1, %v4252_v4  ;;  %v1941_v40 = vrot.slane %v1902_v1, %v4051_v11 }
 0x39c   :  { %2712 = vmatprep.mubr.bf16.mxu0 %v2287_v45  ;;  %v2284_v47 = vpack.c.bf16 %v2228_v30, %v2224_v6  ;;  %v2230_v19 = vmax.f32 %v2166_v48, 0.0  ;;  %v1949_v41 = vrot.slane %v1902_v1, %v4255_v37  ;;  %v1961_v23 = vrot.slane %v1904_v44, %v4054_v14 }
 0x39d   :  { %v2083_v54 = vadd.f32 %v1945_v61, %v4180_v38  ;;  %v2087_v3 = vadd.f32 %v1945_v61, %v4184_v52  ;;  %v2085_v12 = vadd.f32 %v1953_v21, %v4133_v57  ;;  %v2089_v60 = vadd.f32 %v1953_v21, %v4143_v7 }
 0x39e   :  { %2616 = vmatmul.mubr.bf16.gmra.mrb[56].mxu1 %v2284_v47  ;;  %v2286_v33 = vpack.c.bf16 %v2230_v19, %v2226_v55  ;;  %v2082_v0 = vadd.f32 %v1941_v40, %v4175_v35  ;;  %v2086_v32 = vadd.f32 %v1941_v40, %v4182_v43  ;;  %v2084_v34 = vadd.f32 %v1949_v41, %v4128_v46 }
 0x39f   :  { %v2169_v36 = vadd.f32 %v4262_v63, %v2083_v54  ;;  %v2173_v28 = vadd.f32 %v4262_v63, %v2087_v3  ;;  %v2171_v38 = vadd.f32 %v4265_v42, %v2085_v12  ;;  %v2175_v52 = vadd.f32 %v4265_v42, %v2089_v60 }
 0x3a0   :  { %2713 = vmatmul.mubr.bf16.gmra.mrb[56].mxu0 %v2286_v33  ;;  %v2168_v57 = vadd.f32 %v4272_v5, %v2082_v0  ;;  %v2172_v7 = vadd.f32 %v4272_v5, %v2086_v32  ;;  %v2088_v9 = vadd.f32 %v1949_v41, %v4137_v62  ;;  %v2170_v35 = vadd.f32 %v4275_v51, %v2084_v34  ;;  %v4558_v0 = vld [vmem:[#allocation38_spill] sm:$0xff] }
 0x3a1   :  { %v2233_v43 = vmax.f32 %v2169_v36, 0.0  ;;  %v2237_v24 = vmax.f32 %v2173_v28, 0.0  ;;  %v2235_v46 = vmax.f32 %v2171_v38, 0.0  ;;  %v2239_v29 = vmax.f32 %v2175_v52, 0.0 }
 0x3a2   :  { %v2232_v53 = vmax.f32 %v2168_v57, 0.0  ;;  %v2236_v58 = vmax.f32 %v2172_v7, 0.0  ;;  %v2174_v39 = vadd.f32 %v4275_v51, %v2088_v9  ;;  %v2234_v25 = vmax.f32 %v2170_v35, 0.0  ;;  %v4559_v9 = vld [vmem:[#allocation25_spill] sm:$0xff] }
 0x3a3   :  { %v2289_v31 = vpack.c.bf16 %v2237_v24, %v2233_v43  ;;  %v2291_v27 = vpack.c.bf16 %v2239_v29, %v2235_v46  ;;  %v2091_v59 = vadd.f32 %v1961_v23, %v4196_v50  ;;  %v2095_v2 = vadd.f32 %v1961_v23, %v4200_v17  ;;  %v4560_v43 = vld [vmem:[#allocation27_spill] sm:$0xff] }
 0x3a4   :  { %v2288_v20 = vpack.c.bf16 %v2236_v58, %v2232_v53  ;;  %v2238_v26 = vmax.f32 %v2174_v39, 0.0  ;;  %v1969_v62 = vrot.slane %v1904_v44, %v4252_v4  ;;  %v1957_v6 = vrot.slane %v1904_v44, %v4051_v11  ;;  %v4561_v46 = vld [vmem:[#allocation35_spill] sm:$0xff]  ;;  %v4562_v39 = vld [vmem:[#allocation37_spill] sm:$0xff] }
 0x3a5   :  { %2623 = vmatprep.mubr.bf16.mxu1 %v2289_v31  ;;  %2720 = vmatprep.mubr.bf16.mxu0 %v2291_v27  ;;  %v2177_v13 = vadd.f32 %v4262_v63, %v2091_v59  ;;  %v2181_v1 = vadd.f32 %v4262_v63, %v2095_v2  ;;  %v1965_v45 = vrot.slane %v1904_v44, %v4255_v37  ;;  %v4563_v31 = vld [vmem:[#allocation24_spill] sm:$0xff] }
 0x3a6   :  { %2624 = vmatmul.mubr.bf16.gmra.mrb[60].mxu1 %v2288_v20  ;;  %v2290_v30 = vpack.c.bf16 %v2238_v26, %v2234_v25  ;;  %v2093_v50 = vadd.f32 %v1969_v62, %v4154_v16  ;;  %v2097_v17 = vadd.f32 %v1969_v62, %v4160_v22  ;;  %v2090_v48 = vadd.f32 %v1957_v6, %v4192_v8  ;;  %v4564_v26 = vld [vmem:[#allocation26_spill] sm:$0xff] }
 0x3a7   :  { %v2241_v55 = vmax.f32 %v2177_v13, 0.0  ;;  %v2245_v61 = vmax.f32 %v2181_v1, 0.0  ;;  %v2094_v21 = vadd.f32 %v1957_v6, %v4198_v15  ;;  %v2092_v40 = vadd.f32 %v1965_v45, %v4152_v10 }
 0x3a8   :  { %2721 = vmatmul.mubr.bf16.gmra.mrb[60].mxu0 %v2290_v30  ;;  %v2179_v47 = vadd.f32 %v4265_v42, %v2093_v50  ;;  %v2183_v19 = vadd.f32 %v4265_v42, %v2097_v17  ;;  %v2176_v44 = vadd.f32 %v4272_v5, %v2090_v48  ;;  %v2096_v41 = vadd.f32 %v1965_v45, %v4156_v18  ;;  %v4565_v45 = vld [vmem:[#allocation55_spill] sm:$0xff] }
 0x3a9   :  { %v2293_v16 = vpack.c.bf16 %v2245_v61, %v2241_v55  ;;  %v2180_v22 = vadd.f32 %v4272_v5, %v2094_v21  ;;  %v2178_v8 = vadd.f32 %v4275_v51, %v2092_v40  ;;  %v1977_v23 = vrot.slane %v4267_v56, %v4054_v14  ;;  %v4566_v40 = vld [vmem:[#allocation44_spill] sm:$0xff] }
 0x3aa   :  { %v2243_v15 = vmax.f32 %v2179_v47, 0.0  ;;  %v2247_v54 = vmax.f32 %v2183_v19, 0.0  ;;  %v2240_v10 = vmax.f32 %v2176_v44, 0.0  ;;  %v2182_v3 = vadd.f32 %v4275_v51, %v2096_v41  ;;  %v4567_v19 = vld [vmem:[#allocation46_spill] sm:$0xff] }
 0x3ab   :  { %2631 = vmatprep.mubr.bf16.mxu1 %v2293_v16  ;;  %v2244_v12 = vmax.f32 %v2180_v22, 0.0  ;;  %v2242_v60 = vmax.f32 %v2178_v8, 0.0  ;;  %v2099_v33 = vadd.f32 %v1977_v23, %v4212_v49  ;;  %v2103_v18 = vadd.f32 %v1977_v23, %v4558_v0 }
 0x3ac   :  { %v2295_v32 = vpack.c.bf16 %v2247_v54, %v2243_v15  ;;  %v2246_v34 = vmax.f32 %v2182_v3, 0.0  ;;  %v1985_v36 = vrot.slane %v4267_v56, %v4252_v4  ;;  %v1973_v28 = vrot.slane %v4267_v56, %v4051_v11 }
 0x3ad   :  { %v2292_v38 = vpack.c.bf16 %v2244_v12, %v2240_v10  ;;  %v2185_v52 = vadd.f32 %v4262_v63, %v2099_v33  ;;  %v2189_v57 = vadd.f32 %v4262_v63, %v2103_v18  ;;  %v1981_v7 = vrot.slane %v4267_v56, %v4255_v37  ;;  %v4568_v12 = vld [vmem:[#allocation29_spill] sm:$0xff]  ;;  %v4569_v33 = vld [vmem:[#allocation31_spill] sm:$0xff]  ;;  %v4570_v18 = vld [vmem:[#allocation42_spill] sm:$0xff] }
 0x3ae   :  { %2728 = vmatprep.mubr.bf16.mxu0 %v2295_v32  ;;  %v2294_v49 = vpack.c.bf16 %v2246_v34, %v2242_v60  ;;  %v2101_v35 = vadd.f32 %v1985_v36, %v4559_v9  ;;  %v2105_v24 = vadd.f32 %v1985_v36, %v4560_v43  ;;  %v2098_v29 = vadd.f32 %v1973_v28, %v4561_v46 }
 0x3af   :  { %2632 = vmatmul.mubr.bf16.gmra.mrb[64].mxu1 %v2292_v38  ;;  %v2249_v53 = vmax.f32 %v2185_v52, 0.0  ;;  %v2253_v58 = vmax.f32 %v2189_v57, 0.0  ;;  %v2102_v25 = vadd.f32 %v1973_v28, %v4562_v39  ;;  %v2100_v27 = vadd.f32 %v1981_v7, %v4563_v31  ;;  %v4571_v28 = vld [vmem:[#allocation45_spill] sm:$0xff]  ;;  %v4572_v52 = vld [vmem:[#allocation28_spill] sm:$0xff] }
 0x3b0   :  { %2729 = vmatmul.mubr.bf16.gmra.mrb[64].mxu0 %v2294_v49  ;;  %v2187_v59 = vadd.f32 %v4265_v42, %v2101_v35  ;;  %v2191_v2 = vadd.f32 %v4265_v42, %v2105_v24  ;;  %v2184_v20 = vadd.f32 %v4272_v5, %v2098_v29  ;;  %v2104_v62 = vadd.f32 %v1981_v7, %v4564_v26  ;;  %v4573_v35 = vld [vmem:[#allocation30_spill] sm:$0xff] }
 0x3b1   :  { %v2297_v6 = vpack.c.bf16 %v2253_v58, %v2249_v53  ;;  %v2188_v13 = vadd.f32 %v4272_v5, %v2102_v25  ;;  %v2186_v1 = vadd.f32 %v4275_v51, %v2100_v27  ;;  %v1993_v30 = vrot.slane %v4565_v45, %v4054_v14 }
 0x3b2   :  { %v2251_v50 = vmax.f32 %v2187_v59, 0.0  ;;  %v2255_v17 = vmax.f32 %v2191_v2, 0.0  ;;  %v2248_v48 = vmax.f32 %v2184_v20, 0.0  ;;  %v2190_v55 = vadd.f32 %v4275_v51, %v2104_v62 }
 0x3b3   :  { %2639 = vmatprep.mubr.bf16.mxu1 %v2297_v6  ;;  %v2252_v61 = vmax.f32 %v2188_v13, 0.0  ;;  %v2250_v21 = vmax.f32 %v2186_v1, 0.0  ;;  %v2107_v47 = vadd.f32 %v1993_v30, %v4566_v40  ;;  %v2111_v44 = vadd.f32 %v1993_v30, %v4567_v19 }
 0x3b4   :  { %v2299_v41 = vpack.c.bf16 %v2255_v17, %v2251_v50  ;;  %v2254_v16 = vmax.f32 %v2190_v55, 0.0  ;;  %v2001_v22 = vrot.slane %v4565_v45, %v4252_v4  ;;  %v1989_v8 = vrot.slane %v4565_v45, %v4051_v11  ;;  %v4575_v50 = vld [vmem:[#allocation50_spill] sm:$0xff] }
 0x3b5   :  { %v2296_v23 = vpack.c.bf16 %v2252_v61, %v2248_v48  ;;  %v2193_v15 = vadd.f32 %v4262_v63, %v2107_v47  ;;  %v2197_v54 = vadd.f32 %v4262_v63, %v2111_v44  ;;  %v1997_v10 = vrot.slane %v4565_v45, %v4255_v37  ;;  %v4576_v48 = vld [vmem:[#allocation33_spill] sm:$0xff]  ;;  %v4578_v47 = vld [vmem:[#allocation47_spill] sm:$0xff] }
 0x3b6   :  { %2736 = vmatprep.mubr.bf16.mxu0 %v2299_v41  ;;  %v2298_v3 = vpack.c.bf16 %v2254_v16, %v2250_v21  ;;  %v2109_v60 = vadd.f32 %v2001_v22, %v4568_v12  ;;  %v2113_v0 = vadd.f32 %v2001_v22, %v4569_v33  ;;  %v2106_v32 = vadd.f32 %v1989_v8, %v4570_v18  ;;  %v4577_v21 = vld [vmem:[#allocation36_spill] sm:$0xff]  ;;  %v4579_v44 = vld [vmem:[#allocation49_spill] sm:$0xff]  ;;  %v4581_v12 = vld [vmem:[#allocation34_spill] sm:$0xff] }
 0x3b7   :  { %2640 = vmatmul.mubr.bf16.gmra.mrb[68].mxu1 %v2296_v23  ;;  %v2257_v34 = vmax.f32 %v2193_v15, 0.0  ;;  %v2261_v36 = vmax.f32 %v2197_v54, 0.0  ;;  %v2110_v38 = vadd.f32 %v1989_v8, %v4571_v28  ;;  %v2108_v57 = vadd.f32 %v1997_v10, %v4572_v52  ;;  %v4580_v23 = vld [vmem:[#allocation32_spill] sm:$0xff] }
 0x3b8   :  { %2737 = vmatmul.mubr.bf16.gmra.mrb[68].mxu0 %v2298_v3  ;;  %v2195_v7 = vadd.f32 %v4265_v42, %v2109_v60  ;;  %v2199_v49 = vadd.f32 %v4265_v42, %v2113_v0  ;;  %v2192_v9 = vadd.f32 %v4272_v5, %v2106_v32  ;;  %v2112_v43 = vadd.f32 %v1997_v10, %v4573_v35 }
 0x3b9   :  { %v2301_v24 = vpack.c.bf16 %v2261_v36, %v2257_v34  ;;  %v2196_v46 = vadd.f32 %v4272_v5, %v2110_v38  ;;  %v2194_v29 = vadd.f32 %v4275_v51, %v2108_v57  ;;  %v1903_v53 = vcombine.high %v4267_v56, %v4267_v56  ;;  %v4574_v56 = vld [vmem:[#allocation48_spill] sm:$0xff] }
 0x3ba   :  { %v2259_v58 = vmax.f32 %v2195_v7, 0.0  ;;  %v2263_v39 = vmax.f32 %v2199_v49, 0.0  ;;  %v2256_v25 = vmax.f32 %v2192_v9, 0.0  ;;  %v2198_v31 = vadd.f32 %v4275_v51, %v2112_v43 }
 0x3bb   :  { %2647 = vmatprep.mubr.bf16.mxu1 %v2301_v24  ;;  %v2260_v27 = vmax.f32 %v2196_v46, 0.0  ;;  %v2258_v59 = vmax.f32 %v2194_v29, 0.0  ;;  %v2009_v2 = vrot.slane %v1903_v53, %v4054_v14  ;;  %v2017_v20 = vrot.slane %v1903_v53, %v4252_v4 }
 0x3bc   :  { %v2303_v26 = vpack.c.bf16 %v2263_v39, %v2259_v58  ;;  %v2262_v62 = vmax.f32 %v2198_v31, 0.0  ;;  %v2005_v6 = vrot.slane %v1903_v53, %v4051_v11  ;;  %v2013_v13 = vrot.slane %v1903_v53, %v4255_v37  ;;  %v4582_v58 = vld [vmem:[#allocation52_spill] sm:$0xff] }
 0x3bd   :  { %v2300_v1 = vpack.c.bf16 %v2260_v27, %v2256_v25  ;;  %v2115_v30 = vadd.f32 %v2009_v2, %v4574_v56  ;;  %v2119_v17 = vadd.f32 %v2009_v2, %v4575_v50  ;;  %v2117_v55 = vadd.f32 %v2017_v20, %v4576_v48  ;;  %v4583_v25 = vld [vmem:[#allocation54_spill] sm:$0xff] }
 0x3be   :  { %2744 = vmatprep.mubr.bf16.mxu0 %v2303_v26  ;;  %v2302_v61 = vpack.c.bf16 %v2262_v62, %v2258_v59  ;;  %v2121_v40 = vadd.f32 %v2017_v20, %v4577_v21  ;;  %v2114_v19 = vadd.f32 %v2005_v6, %v4578_v47  ;;  %v2118_v41 = vadd.f32 %v2005_v6, %v4579_v44  ;;  %v4585_v59 = vld [vmem:[#allocation43_spill] sm:$0xff]  ;;  %v4587_v26 = vld [vmem:[#allocation53_spill] sm:$0xff] }
 0x3bf   :  { %2648 = vmatmul.mubr.bf16.gmra.mrb[72].mxu1 %v2300_v1  ;;  %v2201_v16 = vadd.f32 %v4262_v63, %v2115_v30  ;;  %v2205_v22 = vadd.f32 %v4262_v63, %v2119_v17  ;;  %v2203_v8 = vadd.f32 %v4265_v42, %v2117_v55  ;;  %v2116_v15 = vadd.f32 %v2013_v13, %v4580_v23  ;;  %v4586_v20 = vld [vmem:[#allocation51_spill] sm:$0xff]  ;;  %v4589_v6 = vld [vmem:[#allocation41_spill] sm:$0xff] }
 0x3c0   :  { %2745 = vmatmul.mubr.bf16.gmra.mrb[72].mxu0 %v2302_v61  ;;  %v2207_v54 = vadd.f32 %v4265_v42, %v2121_v40  ;;  %v2200_v10 = vadd.f32 %v4272_v5, %v2114_v19  ;;  %v2204_v3 = vadd.f32 %v4272_v5, %v2118_v41  ;;  %v2120_v60 = vadd.f32 %v2013_v13, %v4581_v12  ;;  %v4588_v62 = vld [vmem:[#allocation39_spill] sm:$0xff] }
 0x3c1   :  { %v2265_v33 = vmax.f32 %v2201_v16, 0.0  ;;  %v2269_v0 = vmax.f32 %v2205_v22, 0.0  ;;  %v2267_v18 = vmax.f32 %v2203_v8, 0.0  ;;  %v2202_v32 = vadd.f32 %v4275_v51, %v2116_v15  ;;  %v4461_v15 = vld [vmem:[#allocation16] ss:$0 sm:$0xff] }
 0x3c2   :  { %v2271_v34 = vmax.f32 %v2207_v54, 0.0  ;;  %v2264_v36 = vmax.f32 %v2200_v10, 0.0  ;;  %v2268_v28 = vmax.f32 %v2204_v3, 0.0  ;;  %v2206_v38 = vadd.f32 %v4275_v51, %v2120_v60 }
 0x3c3   :  { %v2305_v52 = vpack.c.bf16 %v2269_v0, %v2265_v33  ;;  %v2266_v57 = vmax.f32 %v2202_v32, 0.0  ;;  %v1905_v7 = vcombine.high %v4565_v45, %v4565_v45  ;;  %v4584_v45 = vld [vmem:[#allocation40_spill] sm:$0xff] }
 0x3c4   :  { %v2307_v49 = vpack.c.bf16 %v2271_v34, %v2267_v18  ;;  %v2304_v9 = vpack.c.bf16 %v2268_v28, %v2264_v36  ;;  %v2270_v35 = vmax.f32 %v2206_v38, 0.0 }
 0x3c5   :  { %2655 = vmatprep.mubr.bf16.mxu1 %v2305_v52  ;;  %v2025_v43 = vrot.slane %v1905_v7, %v4054_v14  ;;  %v2033_v24 = vrot.slane %v1905_v7, %v4252_v4  ;;  %v2021_v46 = vrot.slane %v1905_v7, %v4051_v11  ;;  %v2029_v29 = vrot.slane %v1905_v7, %v4255_v37 }
 0x3c6   :  { %2752 = vmatprep.mubr.bf16.mxu0 %v2307_v49  ;;  %v2306_v53 = vpack.c.bf16 %v2270_v35, %v2266_v57 }
 0x3c7   :  { %2656 = vmatmul.mubr.bf16.gmra.mrb[76].mxu1 %v2304_v9  ;;  %v2123_v39 = vadd.f32 %v2025_v43, %v4582_v58  ;;  %v2127_v31 = vadd.f32 %v2025_v43, %v4583_v25  ;;  %v2125_v27 = vadd.f32 %v2033_v24, %v4584_v45  ;;  %v2129_v2 = vadd.f32 %v2033_v24, %v4585_v59 }
 0x3c8   :  { %2753 = vmatmul.mubr.bf16.gmra.mrb[76].mxu0 %v2306_v53  ;;  %v2122_v14 = vadd.f32 %v2021_v46, %v4586_v20  ;;  %v2126_v4 = vadd.f32 %v2021_v46, %v4587_v26  ;;  %v2124_v11 = vadd.f32 %v2029_v29, %v4588_v62  ;;  %v2128_v37 = vadd.f32 %v2029_v29, %v4589_v6 }
 0x3c9   :  { %v2209_v13 = vadd.f32 %v4262_v63, %v2123_v39  ;;  %v2213_v1 = vadd.f32 %v4262_v63, %v2127_v31  ;;  %v2211_v56 = vadd.f32 %v4265_v42, %v2125_v27  ;;  %v2215_v30 = vadd.f32 %v4265_v42, %v2129_v2 }
 0x3ca   :  { %v2208_v50 = vadd.f32 %v4272_v5, %v2122_v14  ;;  %v2212_v17 = vadd.f32 %v4272_v5, %v2126_v4  ;;  %v2210_v48 = vadd.f32 %v4275_v51, %v2124_v11  ;;  %v2214_v55 = vadd.f32 %v4275_v51, %v2128_v37 }
 0x3cb   :  { %v2273_v61 = vmax.f32 %v2209_v13, 0.0  ;;  %v2277_v21 = vmax.f32 %v2213_v1, 0.0  ;;  %v2275_v40 = vmax.f32 %v2211_v56, 0.0  ;;  %v2279_v47 = vmax.f32 %v2215_v30, 0.0 }
 0x3cc   :  { %v2272_v19 = vmax.f32 %v2208_v50, 0.0  ;;  %v2276_v44 = vmax.f32 %v2212_v17, 0.0  ;;  %v2274_v41 = vmax.f32 %v2210_v48, 0.0  ;;  %v2278_v63 = vmax.f32 %v2214_v55, 0.0 }
 0x3cd   :  { %v2309_v16 = vpack.c.bf16 %v2277_v21, %v2273_v61  ;;  %v2311_v22 = vpack.c.bf16 %v2279_v47, %v2275_v40 }
 0x3ce   :  { %v2308_v8 = vpack.c.bf16 %v2276_v44, %v2272_v19  ;;  %v2310_v42 = vpack.c.bf16 %v2278_v63, %v2274_v41 }
 0x3cf   :  { %2663 = vmatprep.mubr.bf16.mxu1 %v2309_v16  ;;  %2760 = vmatprep.mubr.bf16.mxu0 %v2311_v22 }
 0x3d0   :  { %2664 = vmatmul.mubr.bf16.gmra.mrb[80].mxu1 %v2308_v8  ;;  %2761 = vmatmul.mubr.bf16.gmra.mrb[80].mxu0 %v2310_v42 }
 0x469   :  { %v3043_v5 = vpop.f32.mrb[52].mxu1  ;;  %v3107_v23 = vpop.f32.mrb[52].mxu0 }
 0x46a   :  { %v3044_v51 = vpop.f32.mrb[53].mxu1  ;;  %v3108_v54 = vpop.f32.mrb[53].mxu0 }
 0x46b   :  { %v3045_v10 = vadd.f32 %v3044_v51, %v3043_v5  ;;  %v3109_v3 = vadd.f32 %v3108_v54, %v3107_v23  ;;  %v3046_v12 = vpop.f32.mrb[54].mxu1  ;;  %v3110_v60 = vpop.f32.mrb[54].mxu0 }
 0x46c   :  { %v3047_v33 = vpop.f32.mrb[55].mxu1  ;;  %v3111_v0 = vpop.f32.mrb[55].mxu0 }
 0x46d   :  { %v2610_v18 = vadd.f32 %v3045_v10, %v4461_v15  ;;  %v3048_v32 = vadd.f32 %v3047_v33, %v3046_v12  ;;  %v3112_v34 = vadd.f32 %v3111_v0, %v3110_v60 }
 0x46f   :  { %v2707_v36 = vadd.f32 %v3109_v3, %v2610_v18  ;;  %v2613_v28 = vadd.f32 %v3048_v32, %v4461_v15 }
 0x471   :  { %v2710_v38 = vadd.f32 %v3112_v34, %v2613_v28  ;;  %v3049_v52 = vpop.f32.mrb[56].mxu1  ;;  %v2770_v7 = vsel %vm2769_vm7, %v2707_v36, -inf }
 0x472   :  { %v3050_v57 = vpop.f32.mrb[57].mxu1 }
 0x473   :  { %v2771_v49 = vsel %vm2769_vm7, %v2710_v38, -inf  ;;  %v3113_v9 = vpop.f32.mrb[56].mxu0  ;;  %v3051_v35 = vadd.f32 %v3050_v57, %v3049_v52  ;;  %v3052_v43 = vpop.f32.mrb[58].mxu1 }
 0x474   :  { %v2772_v24 = vmax.f32 %v2770_v7, %v2771_v49  ;;  %v3114_v46 = vpop.f32.mrb[57].mxu0  ;;  %v3053_v29 = vpop.f32.mrb[59].mxu1 }
 0x475   :  { %v2618_v53 = vadd.f32 %v3051_v35, %v4461_v15  ;;  %v3115_v58 = vadd.f32 %v3114_v46, %v3113_v9  ;;  %v3116_v39 = vpop.f32.mrb[58].mxu0  ;;  %v3054_v25 = vadd.f32 %v3053_v29, %v3052_v43 }
 0x476   :  { %v2773_v31 = vrot.slane %v2772_v24, 4  ;;  %v3117_v45 = vpop.f32.mrb[59].mxu0 }
 0x477   :  { %v2715_v27 = vadd.f32 %v3115_v58, %v2618_v53  ;;  %v2621_v59 = vadd.f32 %v3054_v25, %v4461_v15  ;;  %v3118_v2 = vadd.f32 %v3117_v45, %v3116_v39 }
 0x478   :  { %v2774_v20 = vmax.f32 %v2772_v24, %v2773_v31 }
 0x479   :  { %v2718_v14 = vadd.f32 %v3118_v2, %v2621_v59  ;;  %v3055_v26 = vpop.f32.mrb[60].mxu1  ;;  %v2779_v11 = vsel %vm2769_vm7, %v2715_v27, -inf }
 0x47a   :  { %v3056_v4 = vpop.f32.mrb[61].mxu1  ;;  %v2775_v62 = vrot.slane %v2774_v20, 2 }
 0x47b   :  { %v2780_v6 = vsel %vm2769_vm7, %v2718_v14, -inf  ;;  %v3119_v37 = vpop.f32.mrb[60].mxu0  ;;  %v3057_v13 = vadd.f32 %v3056_v4, %v3055_v26  ;;  %v3058_v1 = vpop.f32.mrb[62].mxu1 }
 0x47c   :  { %v2781_v56 = vmax.f32 %v2779_v11, %v2780_v6  ;;  %v3120_v30 = vpop.f32.mrb[61].mxu0  ;;  %v3059_v50 = vpop.f32.mrb[63].mxu1  ;;  %v2776_v47 = vmax.f32 %v2774_v20, %v2775_v62 }
 0x47d   :  { %v2626_v17 = vadd.f32 %v3057_v13, %v4461_v15  ;;  %v3121_v48 = vadd.f32 %v3120_v30, %v3119_v37  ;;  %v3122_v55 = vpop.f32.mrb[62].mxu0  ;;  %v3060_v61 = vadd.f32 %v3059_v50, %v3058_v1 }
 0x47e   :  { %v2782_v21 = vrot.slane %v2781_v56, 4  ;;  %v3123_v40 = vpop.f32.mrb[63].mxu0  ;;  %v2777_v42 = vrot.slane %v2776_v47, 1 }
 0x47f   :  { %v2723_v19 = vadd.f32 %v3121_v48, %v2626_v17  ;;  %v2629_v44 = vadd.f32 %v3060_v61, %v4461_v15  ;;  %v3124_v41 = vadd.f32 %v3123_v40, %v3122_v55 }
 0x480   :  { %v2783_v63 = vmax.f32 %v2781_v56, %v2782_v21  ;;  %v2778_v57 = vmax.f32 %v2776_v47, %v2777_v42 }
 0x481   :  { %v2726_v16 = vadd.f32 %v3124_v41, %v2629_v44  ;;  %v2788_v5 = vsel %vm2769_vm7, %v2723_v19, -inf }
 0x482   :  { %v2784_v22 = vrot.slane %v2783_v63, 2  ;;  %v3061_v8 = vpop.f32.mrb[64].mxu1 }
 0x483   :  { %v2789_v23 = vsel %vm2769_vm7, %v2726_v16, -inf  ;;  %v3125_v51 = vpop.f32.mrb[64].mxu0  ;;  %v3062_v54 = vpop.f32.mrb[65].mxu1 }
 0x484   :  { %v2785_v10 = vmax.f32 %v2783_v63, %v2784_v22  ;;  %v2790_v3 = vmax.f32 %v2788_v5, %v2789_v23  ;;  %v3063_v12 = vadd.f32 %v3062_v54, %v3061_v8  ;;  %v3126_v60 = vpop.f32.mrb[65].mxu0  ;;  %v3064_v33 = vpop.f32.mrb[66].mxu1 }
 0x485   :  { %v3127_v0 = vadd.f32 %v3126_v60, %v3125_v51  ;;  %v3128_v18 = vpop.f32.mrb[66].mxu0  ;;  %v3065_v32 = vpop.f32.mrb[67].mxu1 }
 0x486   :  { %v2786_v34 = vrot.slane %v2785_v10, 1  ;;  %v2791_v36 = vrot.slane %v2790_v3, 4  ;;  %v2634_v28 = vadd.f32 %v3063_v12, %v4461_v15  ;;  %v3066_v38 = vadd.f32 %v3065_v32, %v3064_v33  ;;  %v3129_v52 = vpop.f32.mrb[67].mxu0 }
 0x487   :  { %v3130_v7 = vadd.f32 %v3129_v52, %v3128_v18 }
 0x488   :  { %v2787_v49 = vmax.f32 %v2785_v10, %v2786_v34  ;;  %v2792_v9 = vmax.f32 %v2790_v3, %v2791_v36  ;;  %v2731_v35 = vadd.f32 %v3127_v0, %v2634_v28  ;;  %v2637_v43 = vadd.f32 %v3066_v38, %v4461_v15 }
 0x48a   :  { %v2850_v24 = vsel %vm1407_vm0, %v2787_v49, %v2778_v57  ;;  %v2793_v46 = vrot.slane %v2792_v9, 2  ;;  %v2734_v29 = vadd.f32 %v3130_v7, %v2637_v43  ;;  %v3067_v53 = vpop.f32.mrb[68].mxu1  ;;  %v2797_v31 = vsel %vm2769_vm7, %v2731_v35, -inf }
 0x48b   :  { %v3131_v58 = vpop.f32.mrb[68].mxu0  ;;  %v3068_v39 = vpop.f32.mrb[69].mxu1 }
 0x48c   :  { %v2794_v25 = vmax.f32 %v2792_v9, %v2793_v46  ;;  %v2798_v45 = vsel %vm2769_vm7, %v2734_v29, -inf  ;;  %v3069_v27 = vadd.f32 %v3068_v39, %v3067_v53  ;;  %v3132_v59 = vpop.f32.mrb[69].mxu0  ;;  %v3070_v2 = vpop.f32.mrb[70].mxu1 }
 0x48d   :  { %v2799_v20 = vmax.f32 %v2797_v31, %v2798_v45  ;;  %v3133_v14 = vadd.f32 %v3132_v59, %v3131_v58  ;;  %v3134_v26 = vpop.f32.mrb[70].mxu0  ;;  %v3071_v4 = vpop.f32.mrb[71].mxu1 }
 0x48e   :  { %v2795_v62 = vrot.slane %v2794_v25, 1  ;;  %v2642_v11 = vadd.f32 %v3069_v27, %v4461_v15  ;;  %v3072_v6 = vadd.f32 %v3071_v4, %v3070_v2  ;;  %v3135_v37 = vpop.f32.mrb[71].mxu0 }
 0x48f   :  { %v2800_v13 = vrot.slane %v2799_v20, 4  ;;  %v3136_v1 = vadd.f32 %v3135_v37, %v3134_v26 }
 0x490   :  { %v2796_v56 = vmax.f32 %v2794_v25, %v2795_v62  ;;  %v2739_v30 = vadd.f32 %v3133_v14, %v2642_v11  ;;  %v2645_v50 = vadd.f32 %v3072_v6, %v4461_v15 }
 0x491   :  { %v2801_v17 = vmax.f32 %v2799_v20, %v2800_v13 }
 0x492   :  { %v2742_v48 = vadd.f32 %v3136_v1, %v2645_v50  ;;  %v3073_v55 = vpop.f32.mrb[72].mxu1  ;;  %v2851_v61 = vsel %vm1409_vm1, %v2796_v56, %v2850_v24  ;;  %v2806_v19 = vsel %vm2769_vm7, %v2739_v30, -inf }
 0x493   :  { %v2802_v21 = vrot.slane %v2801_v17, 2  ;;  %v3137_v40 = vpop.f32.mrb[72].mxu0  ;;  %v3074_v47 = vpop.f32.mrb[73].mxu1 }
 0x494   :  { %v2807_v44 = vsel %vm2769_vm7, %v2742_v48, -inf  ;;  %v3075_v41 = vadd.f32 %v3074_v47, %v3073_v55  ;;  %v3138_v63 = vpop.f32.mrb[73].mxu0  ;;  %v3076_v16 = vpop.f32.mrb[74].mxu1 }
 0x495   :  { %v2803_v22 = vmax.f32 %v2801_v17, %v2802_v21  ;;  %v2808_v8 = vmax.f32 %v2806_v19, %v2807_v44  ;;  %v3139_v42 = vadd.f32 %v3138_v63, %v3137_v40  ;;  %v3140_v5 = vpop.f32.mrb[74].mxu0  ;;  %v3077_v23 = vpop.f32.mrb[75].mxu1 }
 0x496   :  { %v2650_v51 = vadd.f32 %v3075_v41, %v4461_v15  ;;  %v3078_v54 = vadd.f32 %v3077_v23, %v3076_v16  ;;  %v3141_v10 = vpop.f32.mrb[75].mxu0 }
 0x497   :  { %v2804_v3 = vrot.slane %v2803_v22, 1  ;;  %v2809_v12 = vrot.slane %v2808_v8, 4  ;;  %v3142_v60 = vadd.f32 %v3141_v10, %v3140_v5 }
 0x498   :  { %v2747_v33 = vadd.f32 %v3139_v42, %v2650_v51  ;;  %v2653_v0 = vadd.f32 %v3078_v54, %v4461_v15 }
 0x499   :  { %v2805_v18 = vmax.f32 %v2803_v22, %v2804_v3  ;;  %v2810_v32 = vmax.f32 %v2808_v8, %v2809_v12 }
 0x49a   :  { %v2750_v34 = vadd.f32 %v3142_v60, %v2653_v0  ;;  %v3079_v36 = vpop.f32.mrb[76].mxu1  ;;  %v2815_v7 = vsel %vm2769_vm7, %v2747_v33, -inf }
 0x49b   :  { %v2811_v28 = vrot.slane %v2810_v32, 2  ;;  %v3143_v38 = vpop.f32.mrb[76].mxu0  ;;  %v3080_v52 = vpop.f32.mrb[77].mxu1  ;;  %v2852_v57 = vsel %vm1411_vm2, %v2805_v18, %v2851_v61 }
 0x49c   :  { %v2816_v49 = vsel %vm2769_vm7, %v2750_v34, -inf  ;;  %v3081_v9 = vadd.f32 %v3080_v52, %v3079_v36  ;;  %v3144_v35 = vpop.f32.mrb[77].mxu0  ;;  %v3082_v43 = vpop.f32.mrb[78].mxu1 }
 0x49d   :  { %v2812_v24 = vmax.f32 %v2810_v32, %v2811_v28  ;;  %v2817_v46 = vmax.f32 %v2815_v7, %v2816_v49  ;;  %v3145_v29 = vadd.f32 %v3144_v35, %v3143_v38  ;;  %v3146_v53 = vpop.f32.mrb[78].mxu0  ;;  %v3083_v58 = vpop.f32.mrb[79].mxu1 }
 0x49e   :  { %v2658_v39 = vadd.f32 %v3081_v9, %v4461_v15  ;;  %v3084_v25 = vadd.f32 %v3083_v58, %v3082_v43  ;;  %v3147_v31 = vpop.f32.mrb[79].mxu0 }
 0x49f   :  { %v2813_v45 = vrot.slane %v2812_v24, 1  ;;  %v2818_v27 = vrot.slane %v2817_v46, 4  ;;  %v3148_v59 = vadd.f32 %v3147_v31, %v3146_v53 }
 0x4a0   :  { %v2755_v2 = vadd.f32 %v3145_v29, %v2658_v39  ;;  %v2661_v20 = vadd.f32 %v3084_v25, %v4461_v15 }
 0x4a1   :  { %v2814_v14 = vmax.f32 %v2812_v24, %v2813_v45  ;;  %v2819_v26 = vmax.f32 %v2817_v46, %v2818_v27 }
 0x4a2   :  { %v2758_v4 = vadd.f32 %v3148_v59, %v2661_v20  ;;  %v2824_v13 = vsel %vm2769_vm7, %v2755_v2, -inf }
 0x4a3   :  { %v2820_v62 = vrot.slane %v2819_v26, 2  ;;  %v3085_v11 = vpop.f32.mrb[80].mxu1  ;;  %v3149_v6 = vpop.f32.mrb[80].mxu0  ;;  %v2853_v37 = vsel %vm1413_vm3, %v2814_v14, %v2852_v57 }
 0x4a4   :  { %v2825_v1 = vsel %vm2769_vm7, %v2758_v4, -inf  ;;  %v3086_v56 = vpop.f32.mrb[81].mxu1  ;;  %v3150_v30 = vpop.f32.mrb[81].mxu0 }
 0x4a5   :  { %v2821_v50 = vmax.f32 %v2819_v26, %v2820_v62  ;;  %v2826_v17 = vmax.f32 %v2824_v13, %v2825_v1  ;;  %v3087_v48 = vadd.f32 %v3086_v56, %v3085_v11  ;;  %v3151_v55 = vadd.f32 %v3150_v30, %v3149_v6  ;;  %v3088_v61 = vpop.f32.mrb[82].mxu1  ;;  %v3152_v21 = vpop.f32.mrb[82].mxu0 }
 0x4a6   :  { %v3089_v40 = vpop.f32.mrb[83].mxu1  ;;  %v3153_v47 = vpop.f32.mrb[83].mxu0 }
 0x4a7   :  { %v2822_v19 = vrot.slane %v2821_v50, 1  ;;  %v2827_v44 = vrot.slane %v2826_v17, 4  ;;  %v2666_v41 = vadd.f32 %v3087_v48, %v4461_v15  ;;  %v3090_v63 = vadd.f32 %v3089_v40, %v3088_v61 }
 0x4a8   :  { %v3154_v16 = vadd.f32 %v3153_v47, %v3152_v21 }
 0x4a9   :  { %v2823_v22 = vmax.f32 %v2821_v50, %v2822_v19  ;;  %v2828_v8 = vmax.f32 %v2826_v17, %v2827_v44  ;;  %v2763_v42 = vadd.f32 %v3151_v55, %v2666_v41  ;;  %v2669_v5 = vadd.f32 %v3090_v63, %v4461_v15 }
 0x4ab   :  { %v2829_v23 = vrot.slane %v2828_v8, 2  ;;  %v2766_v51 = vadd.f32 %v3154_v16, %v2669_v5  ;;  %v2854_v54 = vsel %vm1415_vm4, %v2823_v22, %v2853_v37  ;;  %v2833_v3 = vsel %vm2769_vm7, %v2763_v42, -inf }
 0x4ad   :  { %v2830_v10 = vmax.f32 %v2828_v8, %v2829_v23  ;;  %v2834_v12 = vsel %vm2769_vm7, %v2766_v51, -inf }
 0x4ae   :  { %v2835_v60 = vmax.f32 %v2833_v3, %v2834_v12 }
 0x4af   :  { %v2831_v33 = vrot.slane %v2830_v10, 1 }
 0x4b0   :  { %v2836_v0 = vrot.slane %v2835_v60, 4 }
 0x4b1   :  { %v2832_v18 = vmax.f32 %v2830_v10, %v2831_v33 }
 0x4b2   :  { %v2837_v32 = vmax.f32 %v2835_v60, %v2836_v0 }
 0x4b3   :  { %v2855_v34 = vsel %vm1417_vm5, %v2832_v18, %v2854_v54 }
 0x4b4   :  { %v2838_v36 = vrot.slane %v2837_v32, 2 }
 0x4b6   :  { %v2839_v28 = vmax.f32 %v2837_v32, %v2838_v36 }
 0x4b8   :  { %v2840_v38 = vrot.slane %v2839_v28, 1 }
 0x4ba   :  { %v2841_v15 = vmax.f32 %v2839_v28, %v2840_v38 }
 0x4bc   :  { %v2856_v52 = vsel %vm1419_vm6, %v2841_v15, %v2855_v34 }
 0x4bd   :  { %2858 = vst.msk [vmem:[#allocation17] sm:$0xff] %vm2769_vm7, %v2856_v52 }
 0x4be   :  { %3627 = shalt.err (!%p3624_p6)
}
 0x4bf   :  { %s3628_s27 = scalar_lea.hbm %s4524_s9, 128 }
 0x4c0   :  { %p3629_p7 = scmp.ne.s32.totalorder %s4524_s9, %s3628_s27  ;;  %p3632_p8 = scmp.lt.u32.totalorder %s3628_s27, %s4524_s9 }
 0x4c2   :  { %p3634_p9 = pnand %p3632_p8, %p3629_p7 }
 0x4c4   :  { %3637 = shalt.err (!%p3634_p9)
}
 0x4c5   :  { %2868 = dma.vmem_to_hbm [thread:$0]  %s2866_s25, 128, %s4524_s9, [#allocation4]  }
 0x4c6   :  { %3648 = dma.done.wait [#allocation4], 128  }
 0x4c7   :  { %3649 = vsyncadd [#allocation4], 4294967168 }
 0x4c8   :  { %2872 = vsyncpa [#allocation3], 1 }
 0x4c9   :  { %2873 = vsyncpa [#allocation6], 1 }
 0x4ca   :  { %2874 = vsyncpa [#allocation9], 1 }
 0x4cb   :  { %2875 = vsyncpa [#allocation12], 1 }
 0x4cc   :  { %2876 = vsyncpa [#allocation15], 1 }
 0x4cd   :  { %2877 = vsyncpa [#allocation4], 1 }

</bundles_post_ra>
